<compile_context>
chip_gen: v5e
topology: v5e:2x2
jax: 0.10.0
libtpu: 0.0.40
codegen_flags: <defaults>
</compile_context>

<pallas_src>
import functools
import math

import numpy as np
import jax
import jax.numpy as jnp
from jax import lax
from jax.experimental import pallas as pl
from jax.experimental.pallas import tpu as pltpu

EPS = 1e-5


def _round_up(v, m):
    return (v + m - 1) // m * m


def _cdiv(a, b):
    return -(-a // b)


# ----------------------------------------------------------------------------
# Host-side constants: packed per-position boundary masks for the (Hp, Wp) grid
# ----------------------------------------------------------------------------
def _boundary_masks(H, W, Hp, Wp, TB):
    """(8, TB*Hp*Wp) float32 0/1 masks, one padded-sublane tile instead of 7 slabs."""
    hw = np.arange(Hp * Wp)
    h, w = hw // Wp, hw % Wp
    rows = np.stack([
        w >= 1, w <= W - 2,               # valid source position for W-shift -1 / +1
        h >= 1, h <= H - 2,               # valid source position for H-shift -1 / +1
        w == 0, w == W - 1,               # columns receiving conv4's W-edge correction
        (h == 0) | (h == H - 1),          # rows where conv4 sees only its zero H-pad
        np.zeros(Hp * Wp, bool),          # filler row (keeps the sublane count at 8)
    ]).astype(np.float32)                 # (8, Hp*Wp)
    return np.tile(rows, (1, TB))         # (8, TB*Hp*Wp)


# ----------------------------------------------------------------------------
# Tiling heuristics (lane density first, then VMEM budget, then >= 4 grid steps)
# ----------------------------------------------------------------------------
def _choose_geometry(H, W):
    """Smallest (Hp, Wp) >= (H, W) such that `unit` slabs give a 128-multiple lane
    width with unit <= 8 (real ResNet HW values 49/196/784/3136 are not multiples of
    128; minimal spatial padding beats masked vst.msk partial stores)."""
    best = None
    for Hp in range(H, _round_up(H, 8) + 1):
        for Wp in range(W, _round_up(W, 8) + 1):
            unit = 128 // math.gcd(Hp * Wp, 128)
            if unit <= 8:
                key = (Hp * Wp, unit)
                if best is None or key < best[0]:
                    best = (key, Hp, Wp, unit)
    _, Hp, Wp, unit = best                # always found: multiples of 8 give unit <= 2
    return Hp, Wp, unit


def _choose_tiling(B, H, W, Cp, act_budget_bytes):
    Hp, Wp, unit = _choose_geometry(H, W)
    hwp = Hp * Wp
    # ~12 live f32 (Cp, hwp) slabs per batched slab: double-buffered x/out blocks,
    # a1..a3, rolled taps and the f32 accumulator.
    bytes_per_slab = hwp * Cp * 4 * 12
    cap = max(unit, (act_budget_bytes // bytes_per_slab) // unit * unit)
    tb = min(cap, _round_up(max(B, 1), unit))
    # prefer >= 4 grid steps (2 per v7x TensorCore, grid is "parallel") when possible
    while tb > unit and _cdiv(B, tb) < 4:
        tb -= unit
    n_steps = _cdiv(max(B, 1), tb)
    return Hp, Wp, tb, n_steps, tb * n_steps


def _vmem_limit_bytes():
    """Generation-aware scoped-VMEM request (v5e/v6e: 128 MiB physical, v7x: 64 MiB)."""
    try:
        cap = int(pltpu.get_tpu_info().vmem_capacity_bytes)
    except Exception:                     # query unavailable: assume v7x's 64 MiB
        cap = 64 << 20
    return int(min(max(cap // 2, 16 << 20), 64 << 20))


# ----------------------------------------------------------------------------
# Grid-invariant BlockSpecs (single-buffered when this jax build supports it)
# ----------------------------------------------------------------------------
def _default_invariant_spec(block_shape):
    return pl.BlockSpec(block_shape, lambda *_: (0,) * len(block_shape))


def _single_buffered_spec(block_shape):
    # Grid-invariant operand: fetched once; single VMEM buffer (no double-buffer cost
    # -- matters at real channel counts where the fused weights are MiB-scale on v7x).
    try:
        return pl.BlockSpec(block_shape, lambda *_: (0,) * len(block_shape),
                            pipeline_mode=pl.Buffered(1))
    except Exception:                     # older jax: no pipeline_mode / Buffered
        return _default_invariant_spec(block_shape)


# ----------------------------------------------------------------------------
# Pallas kernel: one (Cp, TB*Hp*Wp) lane-dense chunk per grid step, block fully fused
# ----------------------------------------------------------------------------
def _basic_block_kernel(x_ref, w_ref, const_ref, mask_ref, out_ref, *,
                        row_stride, compute_dtype):
    n = x_ref.shape[-1]
    x = x_ref[...]                                      # (Cp, n) f32 residual chunk
    cd = compute_dtype

    m_w_lo = mask_ref[0:1].astype(cd)                   # 0/1 source-validity masks for
    m_w_hi = mask_ref[1:2].astype(cd)                   # the +-1 (W) / +-row (H) shifts
    m_h_lo = mask_ref[2:3].astype(cd)
    m_h_hi = mask_ref[3:4].astype(cd)
    is_w0 = mask_ref[4:5] != 0.0                        # conv4 w-edge columns
    is_wl = mask_ref[5:6] != 0.0
    is_border = mask_ref[6:7] != 0.0                    # conv4 zero-H-pad output rows

    def conv(v, k, step, m_lo, m_hi):
        # taps t = 0, 1, 2 read lane p + (t-1)*step inside the (h, w) grid (0 over the
        # zero padding): XLU lane rotation + VPU mask, then 3 accumulated MXU matmuls
        # against the BN-scale-folded per-tap weights (no (3*Cp, n) concat is built).
        vc = v.astype(cd)
        lo = pltpu.roll(vc, step, axis=1) * m_lo        # v[:, p - step]
        hi = pltpu.roll(vc, (n - step) % n, axis=1) * m_hi   # v[:, p + step]
        acc = jnp.dot(w_ref[3 * k + 1], vc, preferred_element_type=jnp.float32)
        acc += jnp.dot(w_ref[3 * k + 0], lo, preferred_element_type=jnp.float32)
        acc += jnp.dot(w_ref[3 * k + 2], hi, preferred_element_type=jnp.float32)
        return acc

    bias = lambda k: const_ref[:, k:k + 1]              # folded-BN bias (scale is in W)
    relu = lambda v: jnp.maximum(v, 0.0)

    a1 = relu(conv(x, 0, row_stride, m_h_lo, m_h_hi) + bias(0))   # conv1 (1,3,1) pad (0,1,0)
    a2 = relu(conv(a1, 1, 1, m_w_lo, m_w_hi) + bias(1))           # conv2 (1,1,3) pad (0,0,1)
    # conv3 (1,3,1), pad (0,0,1): rows h=1..H-2 hold its valid (H-2)-row core aligned
    # to conv4's output rows; rows h=0 / H-1 are junk that conv4's zero H-padding
    # replaces below (conv4 never mixes rows).
    a3 = relu(conv(a2, 2, row_stride, m_h_lo, m_h_hi) + bias(2))
    # conv4 (1,1,3), pad (0,1,0).  conv3's zero-padded W columns equal relu(bias3)
    # after BN+ReLU; their parameter-only contribution through conv4's outer taps is
    # precomputed (const cols 4/5) and selected in at w == 0 / w == W-1.
    edge = jnp.where(is_w0, const_ref[:, 4:5],
                     jnp.where(is_wl, const_ref[:, 5:6], 0.0))
    mid = conv(a3, 3, 1, m_w_lo, m_w_hi) + (edge + bias(3))
    mid = jnp.where(is_border, bias(3), mid)            # h = 0 / H-1 -> bias4 only
    out_ref[...] = relu(x + mid)                        # residual add + final ReLU
                                                        # (single lane-dense store)


# ----------------------------------------------------------------------------
# Parameters (deterministic, synthetic) and BN folding
# ----------------------------------------------------------------------------
def init_params(key, C):
    ks = jax.random.split(key, 20)

    def conv_w(k):  # torch Conv3d weight (O, I, kD, kH, kW) with trivial dims squeezed -> (O, I, 3)
        return (jax.random.normal(k, (C, C, 3), jnp.float32) / np.sqrt(3.0 * C)).astype(jnp.float32)

    def bn(k1, k2, k3, k4):
        gamma = jax.random.uniform(k1, (C,), jnp.float32, 0.5, 1.5)
        beta = 0.1 * jax.random.normal(k2, (C,), jnp.float32)
        mean = 0.1 * jax.random.normal(k3, (C,), jnp.float32)
        var = jax.random.uniform(k4, (C,), jnp.float32, 0.5, 1.5)
        return gamma, beta, mean, var

    params = {f"w{i + 1}": conv_w(ks[i]) for i in range(4)}
    for i in range(4):
        params[f"bn{i + 1}"] = bn(*ks[4 + 4 * i: 8 + 4 * i])
    return params


def fold_bn(bn):
    gamma, beta, mean, var = bn
    s = gamma * lax.rsqrt(var + EPS)
    return s, beta - mean * s


# ----------------------------------------------------------------------------
# Wrapper (glue): layout transform, folded constants, pallas_call
# ----------------------------------------------------------------------------
def basic_block_pallas(x, params, compute_dtype=jnp.bfloat16):
    """Fused BasicBlock forward (inference-mode BN).

    compute_dtype controls only the MXU operand dtype (weights + activation taps);
    accumulation, the BN/ReLU epilogue and the kernel I/O stay float32.  bfloat16 is
    the default (native MXU rate on v5e/v6e/v7x); pass jnp.float32 for strict checks.
    """
    N, C, D, H, W = x.shape
    B = N * D
    cd = np.dtype(compute_dtype)
    Cp = _round_up(C, 16 if cd.itemsize < 4 else 8)     # clean sublane packing

    vmem_limit = _vmem_limit_bytes()
    w_bytes = 12 * Cp * Cp * cd.itemsize                # fused weights (may be 2x-buffered)
    act_budget = max(1 << 20, vmem_limit - 2 * w_bytes - (2 << 20))
    Hp, Wp, TB, n_steps, Bp = _choose_tiling(B, H, W, Cp, act_budget)
    hwp = Hp * Wp
    lane_block = TB * hwp                               # multiple of 128 by construction

    # ---- fold BN (inference) into the conv weights / per-channel biases ----
    folds = [fold_bn(params[f"bn{i + 1}"]) for i in range(4)]
    pad_c = lambda v: jnp.pad(v, ((0, Cp - C),))

    def fuse_w(w, scale):   # torch (O, I, 3) -> (3, Cp, Cp) tap-major, BN scale folded in
        wf = jnp.pad(w * scale[:, None, None], ((0, Cp - C), (0, Cp - C), (0, 0)))
        return jnp.transpose(wf, (2, 0, 1))

    w_stk = jnp.concatenate(
        [fuse_w(params[f"w{i + 1}"], folds[i][0]) for i in range(4)], axis=0
    ).astype(compute_dtype)                             # (12, Cp, Cp), index = 3*k + tap

    # conv3's zero-padded W columns become relu(bn3(0)) = relu(bias3); their conv4
    # contribution (outer taps at w = 0 / W-1) is parameter-only -> precompute it with
    # the same dtype rounding as the in-kernel matmuls.
    biases = [pad_c(f[1]) for f in folds]
    a3_edge = jnp.maximum(biases[2], 0.0).astype(compute_dtype).astype(jnp.float32)
    w4f = w_stk[9:12].astype(jnp.float32)               # (3, Cp, Cp), scale already folded
    consts = jnp.stack(
        biases + [w4f[0] @ a3_edge, w4f[2] @ a3_edge,
                  jnp.zeros((Cp,), jnp.float32), jnp.zeros((Cp,), jnp.float32)],
        axis=1)                                         # (Cp, 8): biases | edge | filler

    masks = jnp.asarray(_boundary_masks(H, W, Hp, Wp, TB))   # (8, lane_block)

    # ---- lane-dense layout: channels on sublanes, TB*(Hp*Wp) positions on lanes ----
    x_b = jnp.transpose(x, (1, 0, 2, 3, 4)).reshape(C, B, H, W)
    x_b = jnp.pad(x_b, ((0, Cp - C), (0, Bp - B), (0, Hp - H), (0, Wp - W)))
    x_flat = x_b.reshape(Cp, Bp * hwp)

    kernel = functools.partial(_basic_block_kernel, row_stride=Wp,
                               compute_dtype=compute_dtype)

    def call(invariant_spec):
        return pl.pallas_call(
            kernel,
            out_shape=jax.ShapeDtypeStruct((Cp, Bp * hwp), jnp.float32),
            grid_spec=pltpu.PrefetchScalarGridSpec(
                num_scalar_prefetch=0,
                grid=(n_steps,),
                in_specs=[
                    pl.BlockSpec((Cp, lane_block), lambda i: (0, i)),
                    invariant_spec((12, Cp, Cp)),       # fused, BN-scaled conv weights
                    invariant_spec((Cp, 8)),            # biases (4) + w-edge terms (2)
                    invariant_spec((8, lane_block)),    # packed 0/1 boundary masks
                ],
                out_specs=pl.BlockSpec((Cp, lane_block), lambda i: (0, i)),
            ),
            compiler_params=pltpu.CompilerParams(
                dimension_semantics=("parallel",),
                vmem_limit_bytes=vmem_limit),
        )(x_flat, w_stk, consts, masks)

    try:
        out_flat = call(_single_buffered_spec)
    except Exception:
        # This jax/libtpu build rejects pipeline_mode=pl.Buffered(1) for the main
        # pipeline: fall back to default (double-buffered) grid-invariant operands.
        out_flat = call(_default_invariant_spec)

    out = out_flat.reshape(Cp, Bp, Hp, Wp)[:C, :B, :H, :W].reshape(C, N, D, H, W)
    return jnp.transpose(out, (1, 0, 2, 3, 4))


# ----------------------------------------------------------------------------
# Pure-JAX reference (same folded-BN semantics) for verification
# ----------------------------------------------------------------------------
def basic_block_reference(x, params):
    def conv(h, w5, pad):
        return lax.conv_general_dilated(
            h, w5, window_strides=(1, 1, 1), padding=pad,
            dimension_numbers=("NCDHW", "OIDHW", "NCDHW"),
            precision=lax.Precision.HIGHEST)

    folds = [fold_bn(params[f"bn{i + 1}"]) for i in range(4)]

    def bn(h, i):
        s, b = folds[i]
        return h * s[None, :, None, None, None] + b[None, :, None, None, None]

    relu = lambda h: jnp.maximum(h, 0.0)
    w1 = params["w1"][:, :, None, :, None]   # (O, I, 1, 3, 1)
    w2 = params["w2"][:, :, None, None, :]   # (O, I, 1, 1, 3)
    w3 = params["w3"][:, :, None, :, None]
    w4 = params["w4"][:, :, None, None, :]

    h = relu(bn(conv(x, w1, [(0, 0), (1, 1), (0, 0)]), 0))
    h = relu(bn(conv(h, w2, [(0, 0), (0, 0), (1, 1)]), 1))
    h = relu(bn(conv(h, w3, [(0, 0), (0, 0), (1, 1)]), 2))
    h = bn(conv(h, w4, [(0, 0), (1, 1), (0, 0)]), 3)
    return relu(x + h)


if __name__ == "__main__":
    key = jax.random.PRNGKey(0)
    kx, kp = jax.random.split(key)
    N, C, D, H, W = 2, 4, 3, 16, 16
    x = jax.random.normal(kx, (N, C, D, H, W), jnp.float32)
    params = init_params(kp, C)

    ref = basic_block_reference(x, params)

    # f32 MXU operands: strict check of the fused-block algorithm.
    out_f32 = jax.block_until_ready(
        basic_block_pallas(x, params, compute_dtype=jnp.float32))
    np.testing.assert_allclose(np.asarray(out_f32), np.asarray(ref),
                               rtol=2e-3, atol=2e-3)

    # default path: bf16 MXU operands (f32 accumulation / epilogue).  Loose tolerance:
    # bf16 operand rounding compounds through 4 chained convs and the residual add.
    out_bf16 = jax.block_until_ready(basic_block_pallas(x, params))
    np.testing.assert_allclose(np.asarray(out_bf16), np.asarray(ref),
                               rtol=1e-1, atol=2e-1)

    print("KERNEL_OK")
</pallas_src>

<mosaic_0001>
module attributes {stable_mosaic.version = 11 : i64} {
  func.func @_basic_block_kernel(%arg0: i32, %arg1: memref<8x256xf32, #tpu.memory_space<vmem>>, %arg2: memref<12x8x8xf32, #tpu.memory_space<vmem>>, %arg3: memref<8x8xf32, #tpu.memory_space<vmem>>, %arg4: memref<8x256xf32, #tpu.memory_space<vmem>>, %arg5: memref<8x256xf32, #tpu.memory_space<vmem>>) attributes {dimension_semantics = [#tpu.dimension_semantics<parallel>], iteration_bounds = array<i64: 6>, scalar_prefetch = 0 : i64, scratch_operands = 0 : i64, tpu.core_type = #tpu.core_type<tc>, window_params = [{transform_indices = @transform_0, window_bounds = array<i64: 8, 256>}, {pipeline_mode = #tpu.pipeline_mode<synchronous>, transform_indices = @transform_1, window_bounds = array<i64: 12, 8, 8>}, {pipeline_mode = #tpu.pipeline_mode<synchronous>, transform_indices = @transform_2, window_bounds = array<i64: 8, 8>}, {pipeline_mode = #tpu.pipeline_mode<synchronous>, transform_indices = @transform_3, window_bounds = array<i64: 8, 256>}, {transform_indices = @transform_4, window_bounds = array<i64: 8, 256>}]} {
    %c0 = arith.constant 0 : index
    %c0_0 = arith.constant 0 : index
    %0 = vector.load %arg1[%c0, %c0_0] : memref<8x256xf32, #tpu.memory_space<vmem>>, vector<8x256xf32>
    %c0_1 = arith.constant 0 : index
    %c0_2 = arith.constant 0 : index
    %1 = vector.load %arg4[%c0_1, %c0_2] : memref<8x256xf32, #tpu.memory_space<vmem>>, vector<1x256xf32>
    %c1 = arith.constant 1 : index
    %c0_3 = arith.constant 0 : index
    %2 = vector.load %arg4[%c1, %c0_3] : memref<8x256xf32, #tpu.memory_space<vmem>>, vector<1x256xf32>
    %c2 = arith.constant 2 : index
    %c0_4 = arith.constant 0 : index
    %3 = vector.load %arg4[%c2, %c0_4] : memref<8x256xf32, #tpu.memory_space<vmem>>, vector<1x256xf32>
    %c3 = arith.constant 3 : index
    %c0_5 = arith.constant 0 : index
    %4 = vector.load %arg4[%c3, %c0_5] : memref<8x256xf32, #tpu.memory_space<vmem>>, vector<1x256xf32>
    %c4 = arith.constant 4 : index
    %c0_6 = arith.constant 0 : index
    %5 = vector.load %arg4[%c4, %c0_6] : memref<8x256xf32, #tpu.memory_space<vmem>>, vector<1x256xf32>
    %cst = arith.constant 0.000000e+00 : f32
    %6 = vector.broadcast %cst : f32 to vector<1x256xf32>
    %7 = arith.cmpf one, %5, %6 : vector<1x256xf32>
    %c5 = arith.constant 5 : index
    %c0_7 = arith.constant 0 : index
    %8 = vector.load %arg4[%c5, %c0_7] : memref<8x256xf32, #tpu.memory_space<vmem>>, vector<1x256xf32>
    %cst_8 = arith.constant 0.000000e+00 : f32
    %9 = vector.broadcast %cst_8 : f32 to vector<1x256xf32>
    %10 = arith.cmpf one, %8, %9 : vector<1x256xf32>
    %c6 = arith.constant 6 : index
    %c0_9 = arith.constant 0 : index
    %11 = vector.load %arg4[%c6, %c0_9] : memref<8x256xf32, #tpu.memory_space<vmem>>, vector<1x256xf32>
    %cst_10 = arith.constant 0.000000e+00 : f32
    %12 = vector.broadcast %cst_10 : f32 to vector<1x256xf32>
    %13 = arith.cmpf one, %11, %12 : vector<1x256xf32>
    %c16_i32 = arith.constant 16 : i32
    %14 = tpu.dynamic_rotate %0 by %c16_i32 dim 1 : vector<8x256xf32>, i32 -> vector<8x256xf32>
    %15 = vector.broadcast %3 : vector<1x256xf32> to vector<8x256xf32>
    %16 = arith.mulf %14, %15 : vector<8x256xf32>
    %c240_i32 = arith.constant 240 : i32
    %17 = tpu.dynamic_rotate %0 by %c240_i32 dim 1 : vector<8x256xf32>, i32 -> vector<8x256xf32>
    %18 = vector.broadcast %4 : vector<1x256xf32> to vector<8x256xf32>
    %19 = arith.mulf %17, %18 : vector<8x256xf32>
    %c1_11 = arith.constant 1 : index
    %c0_12 = arith.constant 0 : index
    %c0_13 = arith.constant 0 : index
    %20 = vector.load %arg2[%c1_11, %c0_12, %c0_13] : memref<12x8x8xf32, #tpu.memory_space<vmem>>, vector<1x8x8xf32>
    %21 = vector.shape_cast %20 : vector<1x8x8xf32> to vector<8x8xf32>
    %cst_14 = arith.constant dense<0.000000e+00> : vector<8x256xf32>
    %22 = tpu.matmul %21, %0, %cst_14 {dimension_numbers = #tpu.dot_dimension_numbers<[1], [0], [0], [1], [0, 0, 1, 1], [], []>} : vector<8x8xf32>, vector<8x256xf32>, vector<8x256xf32> -> vector<8x256xf32>
    %c0_15 = arith.constant 0 : index
    %c0_16 = arith.constant 0 : index
    %c0_17 = arith.constant 0 : index
    %23 = vector.load %arg2[%c0_15, %c0_16, %c0_17] : memref<12x8x8xf32, #tpu.memory_space<vmem>>, vector<1x8x8xf32>
    %24 = vector.shape_cast %23 : vector<1x8x8xf32> to vector<8x8xf32>
    %cst_18 = arith.constant dense<0.000000e+00> : vector<8x256xf32>
    %25 = tpu.matmul %24, %16, %cst_18 {dimension_numbers = #tpu.dot_dimension_numbers<[1], [0], [0], [1], [0, 0, 1, 1], [], []>} : vector<8x8xf32>, vector<8x256xf32>, vector<8x256xf32> -> vector<8x256xf32>
    %26 = arith.addf %22, %25 : vector<8x256xf32>
    %c2_19 = arith.constant 2 : index
    %c0_20 = arith.constant 0 : index
    %c0_21 = arith.constant 0 : index
    %27 = vector.load %arg2[%c2_19, %c0_20, %c0_21] : memref<12x8x8xf32, #tpu.memory_space<vmem>>, vector<1x8x8xf32>
    %28 = vector.shape_cast %27 : vector<1x8x8xf32> to vector<8x8xf32>
    %cst_22 = arith.constant dense<0.000000e+00> : vector<8x256xf32>
    %29 = tpu.matmul %28, %19, %cst_22 {dimension_numbers = #tpu.dot_dimension_numbers<[1], [0], [0], [1], [0, 0, 1, 1], [], []>} : vector<8x8xf32>, vector<8x256xf32>, vector<8x256xf32> -> vector<8x256xf32>
    %30 = arith.addf %26, %29 : vector<8x256xf32>
    %c0_23 = arith.constant 0 : index
    %c0_24 = arith.constant 0 : index
    %31 = vector.load %arg3[%c0_23, %c0_24] : memref<8x8xf32, #tpu.memory_space<vmem>>, vector<8x1xf32>
    %32 = vector.broadcast %31 : vector<8x1xf32> to vector<8x256xf32>
    %33 = arith.addf %30, %32 : vector<8x256xf32>
    %cst_25 = arith.constant 0.000000e+00 : f32
    %34 = vector.broadcast %cst_25 : f32 to vector<8x256xf32>
    %35 = arith.maximumf %33, %34 : vector<8x256xf32>
    %c1_i32 = arith.constant 1 : i32
    %36 = tpu.dynamic_rotate %35 by %c1_i32 dim 1 : vector<8x256xf32>, i32 -> vector<8x256xf32>
    %37 = vector.broadcast %1 : vector<1x256xf32> to vector<8x256xf32>
    %38 = arith.mulf %36, %37 : vector<8x256xf32>
    %c255_i32 = arith.constant 255 : i32
    %39 = tpu.dynamic_rotate %35 by %c255_i32 dim 1 : vector<8x256xf32>, i32 -> vector<8x256xf32>
    %40 = vector.broadcast %2 : vector<1x256xf32> to vector<8x256xf32>
    %41 = arith.mulf %39, %40 : vector<8x256xf32>
    %c4_26 = arith.constant 4 : index
    %c0_27 = arith.constant 0 : index
    %c0_28 = arith.constant 0 : index
    %42 = vector.load %arg2[%c4_26, %c0_27, %c0_28] : memref<12x8x8xf32, #tpu.memory_space<vmem>>, vector<1x8x8xf32>
    %43 = vector.shape_cast %42 : vector<1x8x8xf32> to vector<8x8xf32>
    %cst_29 = arith.constant dense<0.000000e+00> : vector<8x256xf32>
    %44 = tpu.matmul %43, %35, %cst_29 {dimension_numbers = #tpu.dot_dimension_numbers<[1], [0], [0], [1], [0, 0, 1, 1], [], []>} : vector<8x8xf32>, vector<8x256xf32>, vector<8x256xf32> -> vector<8x256xf32>
    %c3_30 = arith.constant 3 : index
    %c0_31 = arith.constant 0 : index
    %c0_32 = arith.constant 0 : index
    %45 = vector.load %arg2[%c3_30, %c0_31, %c0_32] : memref<12x8x8xf32, #tpu.memory_space<vmem>>, vector<1x8x8xf32>
    %46 = vector.shape_cast %45 : vector<1x8x8xf32> to vector<8x8xf32>
    %cst_33 = arith.constant dense<0.000000e+00> : vector<8x256xf32>
    %47 = tpu.matmul %46, %38, %cst_33 {dimension_numbers = #tpu.dot_dimension_numbers<[1], [0], [0], [1], [0, 0, 1, 1], [], []>} : vector<8x8xf32>, vector<8x256xf32>, vector<8x256xf32> -> vector<8x256xf32>
    %48 = arith.addf %44, %47 : vector<8x256xf32>
    %c5_34 = arith.constant 5 : index
    %c0_35 = arith.constant 0 : index
    %c0_36 = arith.constant 0 : index
    %49 = vector.load %arg2[%c5_34, %c0_35, %c0_36] : memref<12x8x8xf32, #tpu.memory_space<vmem>>, vector<1x8x8xf32>
    %50 = vector.shape_cast %49 : vector<1x8x8xf32> to vector<8x8xf32>
    %cst_37 = arith.constant dense<0.000000e+00> : vector<8x256xf32>
    %51 = tpu.matmul %50, %41, %cst_37 {dimension_numbers = #tpu.dot_dimension_numbers<[1], [0], [0], [1], [0, 0, 1, 1], [], []>} : vector<8x8xf32>, vector<8x256xf32>, vector<8x256xf32> -> vector<8x256xf32>
    %52 = arith.addf %48, %51 : vector<8x256xf32>
    %c0_38 = arith.constant 0 : index
    %c1_39 = arith.constant 1 : index
    %53 = vector.load %arg3[%c0_38, %c1_39] : memref<8x8xf32, #tpu.memory_space<vmem>>, vector<8x1xf32>
    %54 = vector.broadcast %53 : vector<8x1xf32> to vector<8x256xf32>
    %55 = arith.addf %52, %54 : vector<8x256xf32>
    %cst_40 = arith.constant 0.000000e+00 : f32
    %56 = vector.broadcast %cst_40 : f32 to vector<8x256xf32>
    %57 = arith.maximumf %55, %56 : vector<8x256xf32>
    %c16_i32_41 = arith.constant 16 : i32
    %58 = tpu.dynamic_rotate %57 by %c16_i32_41 dim 1 : vector<8x256xf32>, i32 -> vector<8x256xf32>
    %59 = vector.broadcast %3 : vector<1x256xf32> to vector<8x256xf32>
    %60 = arith.mulf %58, %59 : vector<8x256xf32>
    %c240_i32_42 = arith.constant 240 : i32
    %61 = tpu.dynamic_rotate %57 by %c240_i32_42 dim 1 : vector<8x256xf32>, i32 -> vector<8x256xf32>
    %62 = vector.broadcast %4 : vector<1x256xf32> to vector<8x256xf32>
    %63 = arith.mulf %61, %62 : vector<8x256xf32>
    %c7 = arith.constant 7 : index
    %c0_43 = arith.constant 0 : index
    %c0_44 = arith.constant 0 : index
    %64 = vector.load %arg2[%c7, %c0_43, %c0_44] : memref<12x8x8xf32, #tpu.memory_space<vmem>>, vector<1x8x8xf32>
    %65 = vector.shape_cast %64 : vector<1x8x8xf32> to vector<8x8xf32>
    %cst_45 = arith.constant dense<0.000000e+00> : vector<8x256xf32>
    %66 = tpu.matmul %65, %57, %cst_45 {dimension_numbers = #tpu.dot_dimension_numbers<[1], [0], [0], [1], [0, 0, 1, 1], [], []>} : vector<8x8xf32>, vector<8x256xf32>, vector<8x256xf32> -> vector<8x256xf32>
    %c6_46 = arith.constant 6 : index
    %c0_47 = arith.constant 0 : index
    %c0_48 = arith.constant 0 : index
    %67 = vector.load %arg2[%c6_46, %c0_47, %c0_48] : memref<12x8x8xf32, #tpu.memory_space<vmem>>, vector<1x8x8xf32>
    %68 = vector.shape_cast %67 : vector<1x8x8xf32> to vector<8x8xf32>
    %cst_49 = arith.constant dense<0.000000e+00> : vector<8x256xf32>
    %69 = tpu.matmul %68, %60, %cst_49 {dimension_numbers = #tpu.dot_dimension_numbers<[1], [0], [0], [1], [0, 0, 1, 1], [], []>} : vector<8x8xf32>, vector<8x256xf32>, vector<8x256xf32> -> vector<8x256xf32>
    %70 = arith.addf %66, %69 : vector<8x256xf32>
    %c8 = arith.constant 8 : index
    %c0_50 = arith.constant 0 : index
    %c0_51 = arith.constant 0 : index
    %71 = vector.load %arg2[%c8, %c0_50, %c0_51] : memref<12x8x8xf32, #tpu.memory_space<vmem>>, vector<1x8x8xf32>
    %72 = vector.shape_cast %71 : vector<1x8x8xf32> to vector<8x8xf32>
    %cst_52 = arith.constant dense<0.000000e+00> : vector<8x256xf32>
    %73 = tpu.matmul %72, %63, %cst_52 {dimension_numbers = #tpu.dot_dimension_numbers<[1], [0], [0], [1], [0, 0, 1, 1], [], []>} : vector<8x8xf32>, vector<8x256xf32>, vector<8x256xf32> -> vector<8x256xf32>
    %74 = arith.addf %70, %73 : vector<8x256xf32>
    %c0_53 = arith.constant 0 : index
    %c2_54 = arith.constant 2 : index
    %75 = vector.load %arg3[%c0_53, %c2_54] : memref<8x8xf32, #tpu.memory_space<vmem>>, vector<8x1xf32>
    %76 = vector.broadcast %75 : vector<8x1xf32> to vector<8x256xf32>
    %77 = arith.addf %74, %76 : vector<8x256xf32>
    %cst_55 = arith.constant 0.000000e+00 : f32
    %78 = vector.broadcast %cst_55 : f32 to vector<8x256xf32>
    %79 = arith.maximumf %77, %78 : vector<8x256xf32>
    %c0_56 = arith.constant 0 : index
    %c4_57 = arith.constant 4 : index
    %80 = vector.load %arg3[%c0_56, %c4_57] : memref<8x8xf32, #tpu.memory_space<vmem>>, vector<8x1xf32>
    %c0_58 = arith.constant 0 : index
    %c5_59 = arith.constant 5 : index
    %81 = vector.load %arg3[%c0_58, %c5_59] : memref<8x8xf32, #tpu.memory_space<vmem>>, vector<8x1xf32>
    %cst_60 = arith.constant 0.000000e+00 : f32
    %82 = vector.shape_cast %10 : vector<1x256xi1> to vector<1x256xi1>
    %83 = vector.broadcast %82 : vector<1x256xi1> to vector<8x256xi1>
    %84 = vector.shape_cast %81 : vector<8x1xf32> to vector<8x1xf32>
    %85 = vector.broadcast %84 : vector<8x1xf32> to vector<8x256xf32>
    %86 = vector.broadcast %cst_60 : f32 to vector<8x256xf32>
    %87 = arith.select %83, %85, %86 : vector<8x256xi1>, vector<8x256xf32>
    %88 = vector.shape_cast %7 : vector<1x256xi1> to vector<1x256xi1>
    %89 = vector.broadcast %88 : vector<1x256xi1> to vector<8x256xi1>
    %90 = vector.shape_cast %80 : vector<8x1xf32> to vector<8x1xf32>
    %91 = vector.broadcast %90 : vector<8x1xf32> to vector<8x256xf32>
    %92 = arith.select %89, %91, %87 : vector<8x256xi1>, vector<8x256xf32>
    %c1_i32_61 = arith.constant 1 : i32
    %93 = tpu.dynamic_rotate %79 by %c1_i32_61 dim 1 : vector<8x256xf32>, i32 -> vector<8x256xf32>
    %94 = vector.broadcast %1 : vector<1x256xf32> to vector<8x256xf32>
    %95 = arith.mulf %93, %94 : vector<8x256xf32>
    %c255_i32_62 = arith.constant 255 : i32
    %96 = tpu.dynamic_rotate %79 by %c255_i32_62 dim 1 : vector<8x256xf32>, i32 -> vector<8x256xf32>
    %97 = vector.broadcast %2 : vector<1x256xf32> to vector<8x256xf32>
    %98 = arith.mulf %96, %97 : vector<8x256xf32>
    %c10 = arith.constant 10 : index
    %c0_63 = arith.constant 0 : index
    %c0_64 = arith.constant 0 : index
    %99 = vector.load %arg2[%c10, %c0_63, %c0_64] : memref<12x8x8xf32, #tpu.memory_space<vmem>>, vector<1x8x8xf32>
    %100 = vector.shape_cast %99 : vector<1x8x8xf32> to vector<8x8xf32>
    %cst_65 = arith.constant dense<0.000000e+00> : vector<8x256xf32>
    %101 = tpu.matmul %100, %79, %cst_65 {dimension_numbers = #tpu.dot_dimension_numbers<[1], [0], [0], [1], [0, 0, 1, 1], [], []>} : vector<8x8xf32>, vector<8x256xf32>, vector<8x256xf32> -> vector<8x256xf32>
    %c9 = arith.constant 9 : index
    %c0_66 = arith.constant 0 : index
    %c0_67 = arith.constant 0 : index
    %102 = vector.load %arg2[%c9, %c0_66, %c0_67] : memref<12x8x8xf32, #tpu.memory_space<vmem>>, vector<1x8x8xf32>
    %103 = vector.shape_cast %102 : vector<1x8x8xf32> to vector<8x8xf32>
    %cst_68 = arith.constant dense<0.000000e+00> : vector<8x256xf32>
    %104 = tpu.matmul %103, %95, %cst_68 {dimension_numbers = #tpu.dot_dimension_numbers<[1], [0], [0], [1], [0, 0, 1, 1], [], []>} : vector<8x8xf32>, vector<8x256xf32>, vector<8x256xf32> -> vector<8x256xf32>
    %105 = arith.addf %101, %104 : vector<8x256xf32>
    %c11 = arith.constant 11 : index
    %c0_69 = arith.constant 0 : index
    %c0_70 = arith.constant 0 : index
    %106 = vector.load %arg2[%c11, %c0_69, %c0_70] : memref<12x8x8xf32, #tpu.memory_space<vmem>>, vector<1x8x8xf32>
    %107 = vector.shape_cast %106 : vector<1x8x8xf32> to vector<8x8xf32>
    %cst_71 = arith.constant dense<0.000000e+00> : vector<8x256xf32>
    %108 = tpu.matmul %107, %98, %cst_71 {dimension_numbers = #tpu.dot_dimension_numbers<[1], [0], [0], [1], [0, 0, 1, 1], [], []>} : vector<8x8xf32>, vector<8x256xf32>, vector<8x256xf32> -> vector<8x256xf32>
    %109 = arith.addf %105, %108 : vector<8x256xf32>
    %c0_72 = arith.constant 0 : index
    %c3_73 = arith.constant 3 : index
    %110 = vector.load %arg3[%c0_72, %c3_73] : memref<8x8xf32, #tpu.memory_space<vmem>>, vector<8x1xf32>
    %111 = vector.broadcast %110 : vector<8x1xf32> to vector<8x256xf32>
    %112 = arith.addf %92, %111 : vector<8x256xf32>
    %113 = arith.addf %109, %112 : vector<8x256xf32>
    %c0_74 = arith.constant 0 : index
    %c3_75 = arith.constant 3 : index
    %114 = vector.load %arg3[%c0_74, %c3_75] : memref<8x8xf32, #tpu.memory_space<vmem>>, vector<8x1xf32>
    %115 = vector.shape_cast %13 : vector<1x256xi1> to vector<1x256xi1>
    %116 = vector.broadcast %115 : vector<1x256xi1> to vector<8x256xi1>
    %117 = vector.shape_cast %114 : vector<8x1xf32> to vector<8x1xf32>
    %118 = vector.broadcast %117 : vector<8x1xf32> to vector<8x256xf32>
    %119 = arith.select %116, %118, %113 : vector<8x256xi1>, vector<8x256xf32>
    %120 = arith.addf %0, %119 : vector<8x256xf32>
    %cst_76 = arith.constant 0.000000e+00 : f32
    %121 = vector.broadcast %cst_76 : f32 to vector<8x256xf32>
    %122 = arith.maximumf %120, %121 : vector<8x256xf32>
    %c0_77 = arith.constant 0 : index
    %c0_78 = arith.constant 0 : index
    %123 = vector.load %arg5[%c0_77, %c0_78] : memref<8x256xf32, #tpu.memory_space<vmem>>, vector<8x256xf32>
    tpu.vector_store %arg5[%c0_77, %c0_78], %122 {strides = array<i32>} : memref<8x256xf32, #tpu.memory_space<vmem>>, vector<8x256xf32>,
    return
  }
  func.func @transform_0(%arg0: i32) -> (i32, i32) {
    %c0_i32 = arith.constant 0 : i32
    %c0_i32_0 = arith.constant 0 : i32
    return %c0_i32, %arg0 : i32, i32
  }
  func.func @transform_1(%arg0: i32) -> (i32, i32, i32) {
    %c0_i32 = arith.constant 0 : i32
    %c0_i32_0 = arith.constant 0 : i32
    %c0_i32_1 = arith.constant 0 : i32
    %c0_i32_2 = arith.constant 0 : i32
    return %c0_i32, %c0_i32_0, %c0_i32_1 : i32, i32, i32
  }
  func.func @transform_2(%arg0: i32) -> (i32, i32) {
    %c0_i32 = arith.constant 0 : i32
    %c0_i32_0 = arith.constant 0 : i32
    %c0_i32_1 = arith.constant 0 : i32
    return %c0_i32, %c0_i32_0 : i32, i32
  }
  func.func @transform_3(%arg0: i32) -> (i32, i32) {
    %c0_i32 = arith.constant 0 : i32
    %c0_i32_0 = arith.constant 0 : i32
    %c0_i32_1 = arith.constant 0 : i32
    return %c0_i32, %c0_i32_0 : i32, i32
  }
  func.func @transform_4(%arg0: i32) -> (i32, i32) {
    %c0_i32 = arith.constant 0 : i32
    %c0_i32_0 = arith.constant 0 : i32
    return %c0_i32, %arg0 : i32, i32
  }
}

module attributes {stable_mosaic.version = 11 : i64} {
  func.func @_basic_block_kernel(%arg0: i32, %arg1: memref<8x256xf32, #tpu.memory_space<vmem>>, %arg2: memref<12x8x8xf32, #tpu.memory_space<vmem>>, %arg3: memref<8x8xf32, #tpu.memory_space<vmem>>, %arg4: memref<8x256xf32, #tpu.memory_space<vmem>>, %arg5: memref<8x256xf32, #tpu.memory_space<vmem>>) attributes {dimension_semantics = [#tpu.dimension_semantics<parallel>], iteration_bounds = array<i64: 6>, scalar_prefetch = 0 : i64, scratch_operands = 0 : i64, tpu.core_type = #tpu.core_type<tc>, window_params = [{transform_indices = @transform_0, window_bounds = array<i64: 8, 256>}, {pipeline_mode = #tpu.pipeline_mode<synchronous>, transform_indices = @transform_1, window_bounds = array<i64: 12, 8, 8>}, {pipeline_mode = #tpu.pipeline_mode<synchronous>, transform_indices = @transform_2, window_bounds = array<i64: 8, 8>}, {pipeline_mode = #tpu.pipeline_mode<synchronous>, transform_indices = @transform_3, window_bounds = array<i64: 8, 256>}, {transform_indices = @transform_4, window_bounds = array<i64: 8, 256>}]} {
    %c0 = arith.constant 0 : index
    %c0_0 = arith.constant 0 : index
    %0 = vector.load %arg1[%c0, %c0_0] : memref<8x256xf32, #tpu.memory_space<vmem>>, vector<8x256xf32>
    %c0_1 = arith.constant 0 : index
    %c0_2 = arith.constant 0 : index
    %1 = vector.load %arg4[%c0_1, %c0_2] : memref<8x256xf32, #tpu.memory_space<vmem>>, vector<1x256xf32>
    %c1 = arith.constant 1 : index
    %c0_3 = arith.constant 0 : index
    %2 = vector.load %arg4[%c1, %c0_3] : memref<8x256xf32, #tpu.memory_space<vmem>>, vector<1x256xf32>
    %c2 = arith.constant 2 : index
    %c0_4 = arith.constant 0 : index
    %3 = vector.load %arg4[%c2, %c0_4] : memref<8x256xf32, #tpu.memory_space<vmem>>, vector<1x256xf32>
    %c3 = arith.constant 3 : index
    %c0_5 = arith.constant 0 : index
    %4 = vector.load %arg4[%c3, %c0_5] : memref<8x256xf32, #tpu.memory_space<vmem>>, vector<1x256xf32>
    %c4 = arith.constant 4 : index
    %c0_6 = arith.constant 0 : index
    %5 = vector.load %arg4[%c4, %c0_6] : memref<8x256xf32, #tpu.memory_space<vmem>>, vector<1x256xf32>
    %cst = arith.constant 0.000000e+00 : f32
    %6 = vector.broadcast %cst : f32 to vector<1x256xf32>
    %7 = arith.cmpf one, %5, %6 : vector<1x256xf32>
    %c5 = arith.constant 5 : index
    %c0_7 = arith.constant 0 : index
    %8 = vector.load %arg4[%c5, %c0_7] : memref<8x256xf32, #tpu.memory_space<vmem>>, vector<1x256xf32>
    %cst_8 = arith.constant 0.000000e+00 : f32
    %9 = vector.broadcast %cst_8 : f32 to vector<1x256xf32>
    %10 = arith.cmpf one, %8, %9 : vector<1x256xf32>
    %c6 = arith.constant 6 : index
    %c0_9 = arith.constant 0 : index
    %11 = vector.load %arg4[%c6, %c0_9] : memref<8x256xf32, #tpu.memory_space<vmem>>, vector<1x256xf32>
    %cst_10 = arith.constant 0.000000e+00 : f32
    %12 = vector.broadcast %cst_10 : f32 to vector<1x256xf32>
    %13 = arith.cmpf one, %11, %12 : vector<1x256xf32>
    %c16_i32 = arith.constant 16 : i32
    %14 = tpu.dynamic_rotate %0 by %c16_i32 dim 1 : vector<8x256xf32>, i32 -> vector<8x256xf32>
    %15 = vector.broadcast %3 : vector<1x256xf32> to vector<8x256xf32>
    %16 = arith.mulf %14, %15 : vector<8x256xf32>
    %c240_i32 = arith.constant 240 : i32
    %17 = tpu.dynamic_rotate %0 by %c240_i32 dim 1 : vector<8x256xf32>, i32 -> vector<8x256xf32>
    %18 = vector.broadcast %4 : vector<1x256xf32> to vector<8x256xf32>
    %19 = arith.mulf %17, %18 : vector<8x256xf32>
    %c1_11 = arith.constant 1 : index
    %c0_12 = arith.constant 0 : index
    %c0_13 = arith.constant 0 : index
    %20 = vector.load %arg2[%c1_11, %c0_12, %c0_13] : memref<12x8x8xf32, #tpu.memory_space<vmem>>, vector<1x8x8xf32>
    %21 = vector.shape_cast %20 : vector<1x8x8xf32> to vector<8x8xf32>
    %cst_14 = arith.constant dense<0.000000e+00> : vector<8x256xf32>
    %22 = tpu.matmul %21, %0, %cst_14 {dimension_numbers = #tpu.dot_dimension_numbers<[1], [0], [0], [1], [0, 0, 1, 1], [], []>} : vector<8x8xf32>, vector<8x256xf32>, vector<8x256xf32> -> vector<8x256xf32>
    %c0_15 = arith.constant 0 : index
    %c0_16 = arith.constant 0 : index
    %c0_17 = arith.constant 0 : index
    %23 = vector.load %arg2[%c0_15, %c0_16, %c0_17] : memref<12x8x8xf32, #tpu.memory_space<vmem>>, vector<1x8x8xf32>
    %24 = vector.shape_cast %23 : vector<1x8x8xf32> to vector<8x8xf32>
    %cst_18 = arith.constant dense<0.000000e+00> : vector<8x256xf32>
    %25 = tpu.matmul %24, %16, %cst_18 {dimension_numbers = #tpu.dot_dimension_numbers<[1], [0], [0], [1], [0, 0, 1, 1], [], []>} : vector<8x8xf32>, vector<8x256xf32>, vector<8x256xf32> -> vector<8x256xf32>
    %26 = arith.addf %22, %25 : vector<8x256xf32>
    %c2_19 = arith.constant 2 : index
    %c0_20 = arith.constant 0 : index
    %c0_21 = arith.constant 0 : index
    %27 = vector.load %arg2[%c2_19, %c0_20, %c0_21] : memref<12x8x8xf32, #tpu.memory_space<vmem>>, vector<1x8x8xf32>
    %28 = vector.shape_cast %27 : vector<1x8x8xf32> to vector<8x8xf32>
    %cst_22 = arith.constant dense<0.000000e+00> : vector<8x256xf32>
    %29 = tpu.matmul %28, %19, %cst_22 {dimension_numbers = #tpu.dot_dimension_numbers<[1], [0], [0], [1], [0, 0, 1, 1], [], []>} : vector<8x8xf32>, vector<8x256xf32>, vector<8x256xf32> -> vector<8x256xf32>
    %30 = arith.addf %26, %29 : vector<8x256xf32>
    %c0_23 = arith.constant 0 : index
    %c0_24 = arith.constant 0 : index
    %31 = vector.load %arg3[%c0_23, %c0_24] : memref<8x8xf32, #tpu.memory_space<vmem>>, vector<8x1xf32>
    %32 = vector.broadcast %31 : vector<8x1xf32> to vector<8x256xf32>
    %33 = arith.addf %30, %32 : vector<8x256xf32>
    %cst_25 = arith.constant 0.000000e+00 : f32
    %34 = vector.broadcast %cst_25 : f32 to vector<8x256xf32>
    %35 = arith.maximumf %33, %34 : vector<8x256xf32>
    %c1_i32 = arith.constant 1 : i32
    %36 = tpu.dynamic_rotate %35 by %c1_i32 dim 1 : vector<8x256xf32>, i32 -> vector<8x256xf32>
    %37 = vector.broadcast %1 : vector<1x256xf32> to vector<8x256xf32>
    %38 = arith.mulf %36, %37 : vector<8x256xf32>
    %c255_i32 = arith.constant 255 : i32
    %39 = tpu.dynamic_rotate %35 by %c255_i32 dim 1 : vector<8x256xf32>, i32 -> vector<8x256xf32>
    %40 = vector.broadcast %2 : vector<1x256xf32> to vector<8x256xf32>
    %41 = arith.mulf %39, %40 : vector<8x256xf32>
    %c4_26 = arith.constant 4 : index
    %c0_27 = arith.constant 0 : index
    %c0_28 = arith.constant 0 : index
    %42 = vector.load %arg2[%c4_26, %c0_27, %c0_28] : memref<12x8x8xf32, #tpu.memory_space<vmem>>, vector<1x8x8xf32>
    %43 = vector.shape_cast %42 : vector<1x8x8xf32> to vector<8x8xf32>
    %cst_29 = arith.constant dense<0.000000e+00> : vector<8x256xf32>
    %44 = tpu.matmul %43, %35, %cst_29 {dimension_numbers = #tpu.dot_dimension_numbers<[1], [0], [0], [1], [0, 0, 1, 1], [], []>} : vector<8x8xf32>, vector<8x256xf32>, vector<8x256xf32> -> vector<8x256xf32>
    %c3_30 = arith.constant 3 : index
    %c0_31 = arith.constant 0 : index
    %c0_32 = arith.constant 0 : index
    %45 = vector.load %arg2[%c3_30, %c0_31, %c0_32] : memref<12x8x8xf32, #tpu.memory_space<vmem>>, vector<1x8x8xf32>
    %46 = vector.shape_cast %45 : vector<1x8x8xf32> to vector<8x8xf32>
    %cst_33 = arith.constant dense<0.000000e+00> : vector<8x256xf32>
    %47 = tpu.matmul %46, %38, %cst_33 {dimension_numbers = #tpu.dot_dimension_numbers<[1], [0], [0], [1], [0, 0, 1, 1], [], []>} : vector<8x8xf32>, vector<8x256xf32>, vector<8x256xf32> -> vector<8x256xf32>
    %48 = arith.addf %44, %47 : vector<8x256xf32>
    %c5_34 = arith.constant 5 : index
    %c0_35 = arith.constant 0 : index
    %c0_36 = arith.constant 0 : index
    %49 = vector.load %arg2[%c5_34, %c0_35, %c0_36] : memref<12x8x8xf32, #tpu.memory_space<vmem>>, vector<1x8x8xf32>
    %50 = vector.shape_cast %49 : vector<1x8x8xf32> to vector<8x8xf32>
    %cst_37 = arith.constant dense<0.000000e+00> : vector<8x256xf32>
    %51 = tpu.matmul %50, %41, %cst_37 {dimension_numbers = #tpu.dot_dimension_numbers<[1], [0], [0], [1], [0, 0, 1, 1], [], []>} : vector<8x8xf32>, vector<8x256xf32>, vector<8x256xf32> -> vector<8x256xf32>
    %52 = arith.addf %48, %51 : vector<8x256xf32>
    %c0_38 = arith.constant 0 : index
    %c1_39 = arith.constant 1 : index
    %53 = vector.load %arg3[%c0_38, %c1_39] : memref<8x8xf32, #tpu.memory_space<vmem>>, vector<8x1xf32>
    %54 = vector.broadcast %53 : vector<8x1xf32> to vector<8x256xf32>
    %55 = arith.addf %52, %54 : vector<8x256xf32>
    %cst_40 = arith.constant 0.000000e+00 : f32
    %56 = vector.broadcast %cst_40 : f32 to vector<8x256xf32>
    %57 = arith.maximumf %55, %56 : vector<8x256xf32>
    %c16_i32_41 = arith.constant 16 : i32
    %58 = tpu.dynamic_rotate %57 by %c16_i32_41 dim 1 : vector<8x256xf32>, i32 -> vector<8x256xf32>
    %59 = vector.broadcast %3 : vector<1x256xf32> to vector<8x256xf32>
    %60 = arith.mulf %58, %59 : vector<8x256xf32>
    %c240_i32_42 = arith.constant 240 : i32
    %61 = tpu.dynamic_rotate %57 by %c240_i32_42 dim 1 : vector<8x256xf32>, i32 -> vector<8x256xf32>
    %62 = vector.broadcast %4 : vector<1x256xf32> to vector<8x256xf32>
    %63 = arith.mulf %61, %62 : vector<8x256xf32>
    %c7 = arith.constant 7 : index
    %c0_43 = arith.constant 0 : index
    %c0_44 = arith.constant 0 : index
    %64 = vector.load %arg2[%c7, %c0_43, %c0_44] : memref<12x8x8xf32, #tpu.memory_space<vmem>>, vector<1x8x8xf32>
    %65 = vector.shape_cast %64 : vector<1x8x8xf32> to vector<8x8xf32>
    %cst_45 = arith.constant dense<0.000000e+00> : vector<8x256xf32>
    %66 = tpu.matmul %65, %57, %cst_45 {dimension_numbers = #tpu.dot_dimension_numbers<[1], [0], [0], [1], [0, 0, 1, 1], [], []>} : vector<8x8xf32>, vector<8x256xf32>, vector<8x256xf32> -> vector<8x256xf32>
    %c6_46 = arith.constant 6 : index
    %c0_47 = arith.constant 0 : index
    %c0_48 = arith.constant 0 : index
    %67 = vector.load %arg2[%c6_46, %c0_47, %c0_48] : memref<12x8x8xf32, #tpu.memory_space<vmem>>, vector<1x8x8xf32>
    %68 = vector.shape_cast %67 : vector<1x8x8xf32> to vector<8x8xf32>
    %cst_49 = arith.constant dense<0.000000e+00> : vector<8x256xf32>
    %69 = tpu.matmul %68, %60, %cst_49 {dimension_numbers = #tpu.dot_dimension_numbers<[1], [0], [0], [1], [0, 0, 1, 1], [], []>} : vector<8x8xf32>, vector<8x256xf32>, vector<8x256xf32> -> vector<8x256xf32>
    %70 = arith.addf %66, %69 : vector<8x256xf32>
    %c8 = arith.constant 8 : index
    %c0_50 = arith.constant 0 : index
    %c0_51 = arith.constant 0 : index
    %71 = vector.load %arg2[%c8, %c0_50, %c0_51] : memref<12x8x8xf32, #tpu.memory_space<vmem>>, vector<1x8x8xf32>
    %72 = vector.shape_cast %71 : vector<1x8x8xf32> to vector<8x8xf32>
    %cst_52 = arith.constant dense<0.000000e+00> : vector<8x256xf32>
    %73 = tpu.matmul %72, %63, %cst_52 {dimension_numbers = #tpu.dot_dimension_numbers<[1], [0], [0], [1], [0, 0, 1, 1], [], []>} : vector<8x8xf32>, vector<8x256xf32>, vector<8x256xf32> -> vector<8x256xf32>
    %74 = arith.addf %70, %73 : vector<8x256xf32>
    %c0_53 = arith.constant 0 : index
    %c2_54 = arith.constant 2 : index
    %75 = vector.load %arg3[%c0_53, %c2_54] : memref<8x8xf32, #tpu.memory_space<vmem>>, vector<8x1xf32>
    %76 = vector.broadcast %75 : vector<8x1xf32> to vector<8x256xf32>
    %77 = arith.addf %74, %76 : vector<8x256xf32>
    %cst_55 = arith.constant 0.000000e+00 : f32
    %78 = vector.broadcast %cst_55 : f32 to vector<8x256xf32>
    %79 = arith.maximumf %77, %78 : vector<8x256xf32>
    %c0_56 = arith.constant 0 : index
    %c4_57 = arith.constant 4 : index
    %80 = vector.load %arg3[%c0_56, %c4_57] : memref<8x8xf32, #tpu.memory_space<vmem>>, vector<8x1xf32>
    %c0_58 = arith.constant 0 : index
    %c5_59 = arith.constant 5 : index
    %81 = vector.load %arg3[%c0_58, %c5_59] : memref<8x8xf32, #tpu.memory_space<vmem>>, vector<8x1xf32>
    %cst_60 = arith.constant 0.000000e+00 : f32
    %82 = vector.shape_cast %10 : vector<1x256xi1> to vector<1x256xi1>
    %83 = vector.broadcast %82 : vector<1x256xi1> to vector<8x256xi1>
    %84 = vector.shape_cast %81 : vector<8x1xf32> to vector<8x1xf32>
    %85 = vector.broadcast %84 : vector<8x1xf32> to vector<8x256xf32>
    %86 = vector.broadcast %cst_60 : f32 to vector<8x256xf32>
    %87 = arith.select %83, %85, %86 : vector<8x256xi1>, vector<8x256xf32>
    %88 = vector.shape_cast %7 : vector<1x256xi1> to vector<1x256xi1>
    %89 = vector.broadcast %88 : vector<1x256xi1> to vector<8x256xi1>
    %90 = vector.shape_cast %80 : vector<8x1xf32> to vector<8x1xf32>
    %91 = vector.broadcast %90 : vector<8x1xf32> to vector<8x256xf32>
    %92 = arith.select %89, %91, %87 : vector<8x256xi1>, vector<8x256xf32>
    %c1_i32_61 = arith.constant 1 : i32
    %93 = tpu.dynamic_rotate %79 by %c1_i32_61 dim 1 : vector<8x256xf32>, i32 -> vector<8x256xf32>
    %94 = vector.broadcast %1 : vector<1x256xf32> to vector<8x256xf32>
    %95 = arith.mulf %93, %94 : vector<8x256xf32>
    %c255_i32_62 = arith.constant 255 : i32
    %96 = tpu.dynamic_rotate %79 by %c255_i32_62 dim 1 : vector<8x256xf32>, i32 -> vector<8x256xf32>
    %97 = vector.broadcast %2 : vector<1x256xf32> to vector<8x256xf32>
    %98 = arith.mulf %96, %97 : vector<8x256xf32>
    %c10 = arith.constant 10 : index
    %c0_63 = arith.constant 0 : index
    %c0_64 = arith.constant 0 : index
    %99 = vector.load %arg2[%c10, %c0_63, %c0_64] : memref<12x8x8xf32, #tpu.memory_space<vmem>>, vector<1x8x8xf32>
    %100 = vector.shape_cast %99 : vector<1x8x8xf32> to vector<8x8xf32>
    %cst_65 = arith.constant dense<0.000000e+00> : vector<8x256xf32>
    %101 = tpu.matmul %100, %79, %cst_65 {dimension_numbers = #tpu.dot_dimension_numbers<[1], [0], [0], [1], [0, 0, 1, 1], [], []>} : vector<8x8xf32>, vector<8x256xf32>, vector<8x256xf32> -> vector<8x256xf32>
    %c9 = arith.constant 9 : index
    %c0_66 = arith.constant 0 : index
    %c0_67 = arith.constant 0 : index
    %102 = vector.load %arg2[%c9, %c0_66, %c0_67] : memref<12x8x8xf32, #tpu.memory_space<vmem>>, vector<1x8x8xf32>
    %103 = vector.shape_cast %102 : vector<1x8x8xf32> to vector<8x8xf32>
    %cst_68 = arith.constant dense<0.000000e+00> : vector<8x256xf32>
    %104 = tpu.matmul %103, %95, %cst_68 {dimension_numbers = #tpu.dot_dimension_numbers<[1], [0], [0], [1], [0, 0, 1, 1], [], []>} : vector<8x8xf32>, vector<8x256xf32>, vector<8x256xf32> -> vector<8x256xf32>
    %105 = arith.addf %101, %104 : vector<8x256xf32>
    %c11 = arith.constant 11 : index
    %c0_69 = arith.constant 0 : index
    %c0_70 = arith.constant 0 : index
    %106 = vector.load %arg2[%c11, %c0_69, %c0_70] : memref<12x8x8xf32, #tpu.memory_space<vmem>>, vector<1x8x8xf32>
    %107 = vector.shape_cast %106 : vector<1x8x8xf32> to vector<8x8xf32>
    %cst_71 = arith.constant dense<0.000000e+00> : vector<8x256xf32>
    %108 = tpu.matmul %107, %98, %cst_71 {dimension_numbers = #tpu.dot_dimension_numbers<[1], [0], [0], [1], [0, 0, 1, 1], [], []>} : vector<8x8xf32>, vector<8x256xf32>, vector<8x256xf32> -> vector<8x256xf32>
    %109 = arith.addf %105, %108 : vector<8x256xf32>
    %c0_72 = arith.constant 0 : index
    %c3_73 = arith.constant 3 : index
    %110 = vector.load %arg3[%c0_72, %c3_73] : memref<8x8xf32, #tpu.memory_space<vmem>>, vector<8x1xf32>
    %111 = vector.broadcast %110 : vector<8x1xf32> to vector<8x256xf32>
    %112 = arith.addf %92, %111 : vector<8x256xf32>
    %113 = arith.addf %109, %112 : vector<8x256xf32>
    %c0_74 = arith.constant 0 : index
    %c3_75 = arith.constant 3 : index
    %114 = vector.load %arg3[%c0_74, %c3_75] : memref<8x8xf32, #tpu.memory_space<vmem>>, vector<8x1xf32>
    %115 = vector.shape_cast %13 : vector<1x256xi1> to vector<1x256xi1>
    %116 = vector.broadcast %115 : vector<1x256xi1> to vector<8x256xi1>
    %117 = vector.shape_cast %114 : vector<8x1xf32> to vector<8x1xf32>
    %118 = vector.broadcast %117 : vector<8x1xf32> to vector<8x256xf32>
    %119 = arith.select %116, %118, %113 : vector<8x256xi1>, vector<8x256xf32>
    %120 = arith.addf %0, %119 : vector<8x256xf32>
    %cst_76 = arith.constant 0.000000e+00 : f32
    %121 = vector.broadcast %cst_76 : f32 to vector<8x256xf32>
    %122 = arith.maximumf %120, %121 : vector<8x256xf32>
    %c0_77 = arith.constant 0 : index
    %c0_78 = arith.constant 0 : index
    %123 = vector.load %arg5[%c0_77, %c0_78] : memref<8x256xf32, #tpu.memory_space<vmem>>, vector<8x256xf32>
    tpu.vector_store %arg5[%c0_77, %c0_78], %122 {strides = array<i32>} : memref<8x256xf32, #tpu.memory_space<vmem>>, vector<8x256xf32>,
    return
  }
  func.func @transform_0(%arg0: i32) -> (i32, i32) {
    %c0_i32 = arith.constant 0 : i32
    %c0_i32_0 = arith.constant 0 : i32
    return %c0_i32, %arg0 : i32, i32
  }
  func.func @transform_1(%arg0: i32) -> (i32, i32, i32) {
    %c0_i32 = arith.constant 0 : i32
    %c0_i32_0 = arith.constant 0 : i32
    %c0_i32_1 = arith.constant 0 : i32
    %c0_i32_2 = arith.constant 0 : i32
    return %c0_i32, %c0_i32_0, %c0_i32_1 : i32, i32, i32
  }
  func.func @transform_2(%arg0: i32) -> (i32, i32) {
    %c0_i32 = arith.constant 0 : i32
    %c0_i32_0 = arith.constant 0 : i32
    %c0_i32_1 = arith.constant 0 : i32
    return %c0_i32, %c0_i32_0 : i32, i32
  }
  func.func @transform_3(%arg0: i32) -> (i32, i32) {
    %c0_i32 = arith.constant 0 : i32
    %c0_i32_0 = arith.constant 0 : i32
    %c0_i32_1 = arith.constant 0 : i32
    return %c0_i32, %c0_i32_0 : i32, i32
  }
  func.func @transform_4(%arg0: i32) -> (i32, i32) {
    %c0_i32 = arith.constant 0 : i32
    %c0_i32_0 = arith.constant 0 : i32
    return %c0_i32, %arg0 : i32, i32
  }
}

</mosaic_0001>

<bundles_post_ra>
// kernel: tpu_custom_call.1
= control target key start
LH: loop header
LB: loop body
LE: loop exit
PB: predicated region body
PF: predicated region fallthrough
CT: control target
= control target key end

     0   :  { %9 = vsyncpa [#allocation3], 0  ;;  %s1507_s0 = inlined_call_operand.vmem [shape: f32[8,1536], index: 0, kind: input, shape index: {}]   ;;  %s1508_s1 = inlined_call_operand.vmem [shape: f32[12,8,8], index: 1, kind: input, shape index: {}]   ;;  %s1509_s2 = inlined_call_operand.vmem [shape: f32[8,8], index: 2, kind: input, shape index: {}]   ;;  %s1510_s3 = inlined_call_operand.vmem [shape: f32[8,256], index: 3, kind: input, shape index: {}]   ;;  %s1511_s4 = inlined_call_operand.hbm [shape: f32[8,1536], index: 4, kind: output, shape index: {}]  }
   0x1   :  { %11 = vsyncpa [#allocation3 + $0x1], 0  ;;  %s1209_s15 = smov 0   ;;  %s1211_s16 = smov 0  }
   0x2   :  { %s1213_s17 = smov 0   ;;  %s1215_s18 = smov 0  }
   0x3 LB: > { %s1230_s19 = sadd.s32 4294967295, %s1172_s18   ;;  %s1000_s20 = sadd.s32 4294967294, %s1172_s18   ;;  %s1172_s18 = sphi %s1215_s18, %s1517_s18   ;;  %s1168_s17 = sphi %s1213_s17, %s1516_s17   ;;  %s1164_s16 = sphi %s1211_s16, %s1515_s16   ;;  %s1160_s15 = sphi %s1209_s15, %s1514_s15  }
   0x4   : > { %s1234_s21 = sadd.s32 1, %s1172_s18   ;;  %s113_s22 = sadd.s32 1, %s1168_s17 }
   0x5   : > { %s110_s23 = ssub.s32 %s1172_s18, %s1234_s21  ;;  %p123_p0 = scmp.ne.s32.totalorder %s1168_s17, %s1164_s16 }
   0x6   : > { %p111_p1 = scmp.eq.s32.totalorder %s110_s23, 0  ;;  %p124_p2 = scmp.eq.s32.totalorder %s1230_s19, 5 }
   0x7   : > { %p129_p3 = scmp.ne.s32.totalorder %s1164_s16, %s1160_s15  ;;  %p130_p4 = scmp.eq.s32.totalorder %s1000_s20, 5 }
   0x8   : > { %s1245_s24 = scalar_select %p111_p1, %s1168_s17, %s113_s22  }
   0x9   : > { %p1247_p5 = por %p124_p2, %p123_p0  ;;  %p1251_p6 = por %p130_p4, %p129_p3 }
   0xa   : > { %p1003_p7 = scmp.ge.s32.totalorder %s1172_s18, 1  ;;  %p166_p8 = scmp.lt.s32.totalorder %s1172_s18, 7 }
   0xc   : > { %p167_p9 = pnand %p1003_p7, %p166_p8 }
   0xd   : > { %s1005_s27 = sshll.u32 (!%p167_p9), %s1230_s19, 1  ;;  %s1174_s6 = smov (!%p167_p9), 112  }
   0xe   : > { %170 = sbr.rel (%p167_p9) target bundleno = 1088 (0x440), region = 36  ;;  %p193_p10 = scmp.lt.s32.totalorder (!%p167_p9), %s1005_s27, 11 }
   0xf   : > { %s1175_s7 = smov (!%p167_p9), 16   ;;  %s1177_s29 = smov (!%p167_p9), 1  }
  0x10   : > { %s1178_s30 = smov (!%p167_p9), 127   ;;  %s1130_s14 = scalar_lea.hbm (!%p167_p9), %s1511_s4, 96 }
  0x13   : > { %s1519_s27 = smov (!%p193_p10, %s1005_s27), 11  ;;  %v1013_v2 = vld [vmem:[%s1508_s1 + $0x8] sm:$0xff]  ;;  %vm250_vm0 = vcmask 64512   ;;  %v1283_v3 = vld [vmem:[%s1509_s2] sm:$0xff]  ;;  %v1176_v4 = vmov 0   ;;  %v221_v5 = vlaneseq  ;;  %v1018_v26 = vld [vmem:[%s1508_s1 + $0x10] sm:$0xff] }
  0x14   : > { %s1006_s28 = sshll.u32 %s1519_s27, 3  ;;  %1103 = vset.pattern.permute.xlu2 %v1176_v4  ;;  %v1292_v9 = vld [vmem:[%s1510_s3 + $0x2] ss:$8 sm:$0x3]  ;;  %v1179_v43 = vmov 1   ;;  %v1022_v60 = vld [vmem:[%s1508_s1 + $0x18] sm:$0xff] }
  0x15   : > { %s196_s5 = scalar_lea.vmem %s1507_s0, %s1006_s28  ;;  %387 = vperm.xlu2 %1103, %v1283_v3   ;;  %v1287_v8 = vand.u32 127, %v221_v5  ;;  %v1297_v10 = vld [vmem:[%s1510_s3 + $0x3] ss:$8 sm:$0x3]  ;;  %v227_v11 = vperm.slane %v1292_v9, 0  ;;  %v228_v12 = vperm.slane %v1292_v9, 1  ;;  %1104 = vset.pattern.permute.xlu0 %v1179_v43 }
  0x16   : > { %v1261_v0 = vld [vmem:[%s196_s5] sm:$0xff]  ;;  %v1267_v1 = vld [vmem:[%s196_s5 + $0x8] sm:$0xff]  ;;  %v241_v13 = vperm.slane %v1297_v10, 0  ;;  %v242_v14 = vperm.slane %v1297_v10, 1  ;;  %s189_s27 = sand.u32 1, %s1164_s16  }
  0x17   : > { %233 = vrot.lane.b32.xlu1 %v1261_v0, %s1174_s6  ;;  %217 = vrot.lane.b32.xlu0 %v1261_v0, %s1175_s7  ;;  %vm237_vm1 = vcmp.lt.s32.totalorder %v1287_v8, 112  ;;  %vm223_vm2 = vcmp.lt.s32.totalorder %v1287_v8, 16  ;;  %v249_v23 = vld [vmem:[%s1508_s1] sm:$0xff]  ;;  %vm398_vm3 = vcmp.lt.s32.totalorder %v1287_v8, 1  ;;  %vm412_vm4 = vcmp.lt.s32.totalorder %v1287_v8, 127  ;;  %v1027_v63 = vld [vmem:[%s1508_s1 + $0x28] sm:$0xff] }
  0x18   : > { %332 = vmatpush.msra.mxu3 %v1267_v1  ;;  %312 = vmatpush.msra.mxu2 %v1261_v0  ;;  %v1021_v42 = vld [vmem:[%s1508_s1 + $0x20] sm:$0xff] }
  0x19   : > { %1017 = vmatmul.msk.f32.vlgmr.msra.gmra.mxu3 %vm250_vm0, %v1013_v2  ;;  %1016 = vmatmul.msk.f32.vlgmr.msra.gmra.mxu2 %vm250_vm0, %v1013_v2  ;;  %v1344_v45 = vld [vmem:[%s1510_s3] ss:$8 sm:$0x3]  ;;  %v1349_v46 = vld [vmem:[%s1510_s3 + $0x1] ss:$8 sm:$0x3] }
  0x1a   : > { %v402_v47 = vperm.slane %v1344_v45, 0  ;;  %v403_v48 = vperm.slane %v1344_v45, 1  ;;  %v416_v49 = vperm.slane %v1349_v46, 0  ;;  %v417_v50 = vperm.slane %v1349_v46, 1 }
  0x1b   : > { %v1011_v8 = vld [vmem:[%s1510_s3 + $0x5] ss:$8 sm:$0x3]  ;;  %v1010_v46 = vld [vmem:[%s1510_s3 + $0x4] ss:$8 sm:$0x3] }
  0x1c   : > { %vm213_vm5 = vcmp.ne.f32.partialorder %v1011_v8, 0.0  ;;  %vm210_vm6 = vcmp.ne.f32.partialorder %v1010_v46, 0.0 }
  0x1f   : > { %235 = vrot.lane.b32.xlu1 %v1267_v1, %s1174_s6  ;;  %219 = vrot.lane.b32.xlu0 %v1267_v1, %s1175_s7 }
  0x6f   : > { %v388_v33 = vpop.permute.xlu2 %387 }
  0x89   : > { %v234_v6 = vpop.permute.xlu1 %233  ;;  %v218_v7 = vpop.permute.xlu0 %217 }
  0x91   : > { %v236_v15 = vpop.permute.xlu1 %235  ;;  %v220_v16 = vpop.permute.xlu0 %219 }
  0x92   : > { %v238_v17 = vsel %vm237_vm1, %v234_v6, %v236_v15  ;;  %v239_v18 = vsel %vm237_vm1, %v236_v15, %v234_v6  ;;  %v225_v19 = vsel %vm223_vm2, %v220_v16, %v218_v7  ;;  %v224_v20 = vsel %vm223_vm2, %v218_v7, %v220_v16 }
  0x93   : > { %v231_v21 = vmul.f32 %v227_v11, %v225_v19  ;;  %v232_v22 = vmul.f32 %v228_v12, %v224_v20  ;;  %v245_v24 = vmul.f32 %v241_v13, %v238_v17  ;;  %v246_v25 = vmul.f32 %v242_v14, %v239_v18 }
  0x95   : > { %269 = vmatpush.msra.mxu0 %v231_v21  ;;  %289 = vmatpush.msra.mxu1 %v232_v22 }
  0x96   : > { %1014 = vmatmul.msk.f32.vlgmr.msra.gmra.mxu0 %vm250_vm0, %v249_v23  ;;  %1015 = vmatmul.msk.f32.vlgmr.msra.gmra.mxu1 %vm250_vm0, %v249_v23 }
  0x97   : > { %357 = vmatpush.msrb.mxu0 %v245_v24  ;;  %377 = vmatpush.msrb.mxu1 %v246_v25 }
  0x9c   : > { %v314_v29 = vpop.f32.mrf.mxu2  ;;  %v334_v30 = vpop.f32.mrf.mxu3 }
  0x9e   : > { %1019 = vmatmul.msk.f32.vlgmr.msrb.gmra.mxu0 %vm250_vm0, %v1018_v26  ;;  %1020 = vmatmul.msk.f32.vlgmr.msrb.gmra.mxu1 %vm250_vm0, %v1018_v26  ;;  %v1030_v26 = vld [vmem:[%s1508_s1 + $0x38] sm:$0xff] }
 0x113   : > { %v271_v27 = vpop.f32.mrf.mxu0  ;;  %v291_v28 = vpop.f32.mrf.mxu1 }
 0x114   : > { %v315_v31 = vadd.f32 %v314_v29, %v271_v27  ;;  %v335_v32 = vadd.f32 %v334_v30, %v291_v28  ;;  %v1180_v27 = vmov 2  }
 0x11b   : > { %v359_v34 = vpop.f32.mrf.mxu0  ;;  %v379_v35 = vpop.f32.mrf.mxu1 }
 0x11c   : > { %v382_v36 = vadd.f32 %v359_v34, %v315_v31  ;;  %v383_v37 = vadd.f32 %v379_v35, %v335_v32  ;;  %v1031_v34 = vld [vmem:[%s1508_s1 + $0x30] sm:$0xff] }
 0x11e   : > { %v390_v38 = vadd.f32 %v388_v33, %v382_v36  ;;  %v391_v39 = vadd.f32 %v388_v33, %v383_v37 }
 0x120   : > { %v392_v40 = vmax.f32 %v390_v38, 0.0  ;;  %v393_v41 = vmax.f32 %v391_v39, 0.0  ;;  %v1036_v38 = vld [vmem:[%s1508_s1 + $0x40] sm:$0xff] }
 0x122   : > { %396 = vrot.lane.b32.xlu0 %v393_v41, %s1177_s29  ;;  %507 = vmatpush.msra.mxu1 %v393_v41 }
 0x123   : > { %408 = vrot.lane.b32.xlu1 %v392_v40, %s1178_s30  ;;  %394 = vrot.lane.b32.xlu2 %v392_v40, %s1177_s29 }
 0x124   : > { %487 = vmatpush.msra.mxu0 %v392_v40  ;;  %1026 = vmatmul.msk.f32.vlgmr.msra.gmra.mxu1 %vm250_vm0, %v1021_v42 }
 0x125   : > { %1025 = vmatmul.msk.f32.vlgmr.msra.gmra.mxu0 %vm250_vm0, %v1021_v42 }
 0x12a   : > { %560 = vperm.xlu0 %1104, %v1283_v3  }
 0x12b   : > { %410 = vrot.lane.b32.xlu2 %v393_v41, %s1178_s30 }
 0x132   : > { %1105 = vset.pattern.permute.xlu0 %v1180_v27 }
 0x133   : > { %721 = vperm.xlu0 %1105, %v1283_v3  }
 0x17d   : > { %v395_v44 = vpop.permute.xlu2 %394 }
 0x185   : > { %v411_v52 = vpop.permute.xlu2 %410 }
 0x194   : > { %v397_v51 = vpop.permute.xlu0 %396 }
 0x195   : > { %v399_v53 = vsel %vm398_vm3, %v395_v44, %v397_v51  ;;  %v400_v54 = vsel %vm398_vm3, %v397_v51, %v395_v44  ;;  %v409_v55 = vpop.permute.xlu1 %408 }
 0x196   : > { %v413_v56 = vsel %vm412_vm4, %v409_v55, %v411_v52  ;;  %v414_v57 = vsel %vm412_vm4, %v411_v52, %v409_v55  ;;  %v406_v58 = vmul.f32 %v402_v47, %v400_v54  ;;  %v407_v59 = vmul.f32 %v403_v48, %v399_v53 }
 0x197   : > { %v420_v61 = vmul.f32 %v416_v49, %v413_v56  ;;  %v421_v62 = vmul.f32 %v417_v50, %v414_v57  ;;  %v1039_v57 = vld [vmem:[%s1508_s1 + $0x50] sm:$0xff] }
 0x198   : > { %444 = vmatpush.msrb.mxu2 %v406_v58  ;;  %464 = vmatpush.msrb.mxu3 %v407_v59  ;;  %v1181_v58 = vmov 5   ;;  %v1182_v59 = vmov 4  }
 0x199   : > { %1023 = vmatmul.msk.f32.vlgmr.msrb.gmra.mxu2 %vm250_vm0, %v1022_v60  ;;  %1024 = vmatmul.msk.f32.vlgmr.msrb.gmra.mxu3 %vm250_vm0, %v1022_v60  ;;  %v1183_v60 = vmov 3  }
 0x19a   : > { %532 = vmatpush.msra.mxu2 %v420_v61  ;;  %552 = vmatpush.msra.mxu3 %v421_v62 }
 0x19b   : > { %1106 = vset.pattern.permute.xlu0 %v1181_v58  ;;  %1107 = vset.pattern.permute.xlu1 %v1182_v59 }
 0x19c   : > { %v561_v17 = vpop.permute.xlu0 %560  ;;  %734 = vperm.xlu0 %1106, %v1283_v3   ;;  %1108 = vset.pattern.permute.xlu2 %v1183_v60 }
 0x1a1   : > { %1028 = vmatmul.msk.f32.vlgmr.msra.gmra.mxu2 %vm250_vm0, %v1027_v63  ;;  %1029 = vmatmul.msk.f32.vlgmr.msra.gmra.mxu3 %vm250_vm0, %v1027_v63  ;;  %v509_v6 = vpop.f32.mrf.mxu1 }
 0x1a2   : > { %v489_v7 = vpop.f32.mrf.mxu0 }
 0x1a4   : > { %1109 = vset.pattern.permute.xlu0 %v1183_v60 }
 0x21c   : > { %v446_v2 = vpop.f32.mrf.mxu2  ;;  %v466_v5 = vpop.f32.mrf.mxu3 }
 0x21d   : > { %v510_v15 = vadd.f32 %v509_v6, %v466_v5  ;;  %v490_v16 = vadd.f32 %v489_v7, %v446_v2  ;;  %v1040_v7 = vld [vmem:[%s1508_s1 + $0x48] sm:$0xff] }
 0x224   : > { %v534_v18 = vpop.f32.mrf.mxu2  ;;  %v554_v19 = vpop.f32.mrf.mxu3 }
 0x225   : > { %v557_v20 = vadd.f32 %v534_v18, %v490_v16  ;;  %v558_v21 = vadd.f32 %v554_v19, %v510_v15  ;;  %v739_v19 = vsel %vm210_vm6, 1, %v1176_v4 }
 0x227   : > { %v563_v22 = vadd.f32 %v561_v17, %v557_v20  ;;  %v564_v23 = vadd.f32 %v561_v17, %v558_v21  ;;  %v1045_v17 = vld [vmem:[%s1508_s1 + $0x58] sm:$0xff]  ;;  %v1012_v20 = vld [vmem:[%s1510_s3 + $0x6] ss:$8 sm:$0x3]  ;;  %v740_v21 = vperm.slane %v739_v19, 0 }
 0x228   : > { %vm216_vm9 = vcmp.ne.f32.partialorder %v1012_v20, 0.0 }
 0x229   : > { %v565_v24 = vmax.f32 %v563_v22, 0.0  ;;  %v566_v25 = vmax.f32 %v564_v23, 0.0  ;;  %v741_v22 = vperm.slane %v739_v19, 1  ;;  %vm742_vm10 = vcmp.eq.s32.totalorder %v740_v21, 1 }
 0x22b   : > { %569 = vrot.lane.b32.xlu2 %v566_v25, %s1175_s7  ;;  %668 = vmatpush.msrb.mxu3 %v566_v25  ;;  %vm743_vm11 = vcmp.eq.s32.totalorder %v741_v22, 1 }
 0x22c   : > { %567 = vrot.lane.b32.xlu1 %v565_v24, %s1175_s7  ;;  %648 = vmatpush.msrb.mxu2 %v565_v24  ;;  %s1053_s7 = sshll.u32 %s1230_s19, 4 }
 0x22d   : > { %1034 = vmatmul.msk.f32.vlgmr.msrb.gmra.mxu2 %vm250_vm0, %v1030_v26  ;;  %1035 = vmatmul.msk.f32.vlgmr.msrb.gmra.mxu3 %vm250_vm0, %v1030_v26  ;;  %s936_s8 = scalar_lea.hbm %s1511_s4, %s1053_s7 }
 0x233   : > { %577 = vrot.lane.b32.xlu2 %v566_v25, %s1174_s6 }
 0x234   : > { %575 = vrot.lane.b32.xlu1 %v565_v24, %s1174_s6  ;;  %s1004_s6 = sshll.u32 %s189_s27, 4 }
 0x235   : > { %s191_s9 = scalar_lea.vmem [#allocation2], %s1004_s6 }
 0x236   : > { %s938_s19 = sshll.u32 %s191_s9, 4  ;;  %s939_s19 = int_to_ptr.vmem [resolvable:$true] %s938_s19 }
 0x285   : > { %v570_v28 = vpop.permute.xlu2 %569 }
 0x28d   : > { %v578_v35 = vpop.permute.xlu2 %577 }
 0x29e   : > { %v568_v29 = vpop.permute.xlu1 %567 }
 0x29f   : > { %v571_v30 = vsel %vm223_vm2, %v568_v29, %v570_v28  ;;  %v572_v31 = vsel %vm223_vm2, %v570_v28, %v568_v29  ;;  %v911_v29 = vsel %vm216_vm9, 1, %v1176_v4 }
 0x2a0   : > { %v573_v32 = vmul.f32 %v572_v31, %v227_v11  ;;  %v574_v33 = vmul.f32 %v571_v30, %v228_v12 }
 0x2a2   : > { %605 = vmatpush.msrb.mxu0 %v573_v32  ;;  %625 = vmatpush.msrb.mxu1 %v574_v33 }
 0x2a3   : > { %1032 = vmatmul.msk.f32.vlgmr.msrb.gmra.mxu0 %vm250_vm0, %v1031_v34  ;;  %1033 = vmatmul.msk.f32.vlgmr.msrb.gmra.mxu1 %vm250_vm0, %v1031_v34 }
 0x2a6   : > { %v576_v36 = vpop.permute.xlu1 %575 }
 0x2a7   : > { %v579_v37 = vsel %vm237_vm1, %v576_v36, %v578_v35  ;;  %v580_v11 = vsel %vm237_vm1, %v578_v35, %v576_v36  ;;  %v912_v35 = vperm.slane %v911_v29, 0  ;;  %v913_v36 = vperm.slane %v911_v29, 1 }
 0x2a8   : > { %v581_v9 = vmul.f32 %v579_v37, %v241_v13  ;;  %v582_v12 = vmul.f32 %v580_v11, %v242_v14  ;;  %v722_v13 = vpop.permute.xlu0 %721 }
 0x2a9   : > { %vm914_vm12 = vcmp.eq.s32.totalorder %v912_v35, 1  ;;  %vm915_vm13 = vcmp.eq.s32.totalorder %v913_v36, 1 }
 0x2aa   : > { %693 = vmatpush.msra.mxu0 %v581_v9  ;;  %713 = vmatpush.msra.mxu1 %v582_v12 }
 0x2ab   : > { %1037 = vmatmul.msk.f32.vlgmr.msra.gmra.mxu0 %vm250_vm0, %v1036_v38  ;;  %1038 = vmatmul.msk.f32.vlgmr.msra.gmra.mxu1 %vm250_vm0, %v1036_v38 }
 0x2b0   : > { %v670_v41 = vpop.f32.mrf.mxu3  ;;  %v650_v42 = vpop.f32.mrf.mxu2 }
 0x2b1   : > { %v735_v23 = vpop.permute.xlu0 %734 }
 0x320   : > { %v607_v39 = vpop.f32.mrf.mxu0  ;;  %v627_v40 = vpop.f32.mrf.mxu1 }
 0x321   : > { %v671_v43 = vadd.f32 %v670_v41, %v627_v40  ;;  %v651_v44 = vadd.f32 %v650_v42, %v607_v39 }
 0x328   : > { %v695_v51 = vpop.f32.mrf.mxu0  ;;  %v715_v10 = vpop.f32.mrf.mxu1 }
 0x329   : > { %v718_v14 = vadd.f32 %v695_v51, %v651_v44  ;;  %v719_v52 = vadd.f32 %v715_v10, %v671_v43 }
 0x32b   : > { %v724_v53 = vadd.f32 %v722_v13, %v718_v14  ;;  %v725_v54 = vadd.f32 %v722_v13, %v719_v52 }
 0x32d   : > { %v726_v55 = vmax.f32 %v724_v53, 0.0  ;;  %v727_v56 = vmax.f32 %v725_v54, 0.0 }
 0x32f   : > { %752 = vrot.lane.b32.xlu2 %v727_v56, %s1177_s29  ;;  %851 = vmatpush.msrb.mxu1 %v727_v56 }
 0x330   : > { %750 = vrot.lane.b32.xlu1 %v726_v55, %s1177_s29  ;;  %831 = vmatpush.msrb.mxu0 %v726_v55  ;;  %s940_s29 = sshll.u32 %s936_s8, 4  ;;  %s941_s29 = int_to_ptr.hbm [resolvable:$true] %s940_s29 }
 0x331   : > { %1043 = vmatmul.msk.f32.vlgmr.msrb.gmra.mxu0 %vm250_vm0, %v1039_v57  ;;  %1044 = vmatmul.msk.f32.vlgmr.msrb.gmra.mxu1 %vm250_vm0, %v1039_v57  ;;  %s1124_s10 = sshra.s32 %s941_s29, 4  ;;  %s1125_s10 = int_to_ptr.hbm [resolvable:$true] %s1124_s10 }
 0x332   : > { %s1126_s11 = scalar_lea.hbm %s1125_s10, 16  ;;  %p1131_p0 = scmp.lt.s32.totalorder %s1125_s10, %s1511_s4 }
 0x333   : > { %p1127_p11 = scmp.ne.s32.totalorder %s1125_s10, %s1126_s11  ;;  %p1132_p1 = scmp.lt.s32.totalorder %s1130_s14, %s1126_s11 }
 0x335   : > { %p1128_p12 = pnand %p1127_p11, %p1247_p5  ;;  %p1133_p2 = por %p1132_p1, %p1131_p0 }
 0x337   : > { %760 = vrot.lane.b32.xlu2 %v727_v56, %s1178_s30  ;;  %p1129_p13 = pneg %p1128_p12 }
 0x338   : > { %758 = vrot.lane.b32.xlu1 %v726_v55, %s1178_s30  ;;  %s925_s30 = scalar_lea.sflag [#allocation3], %s189_s27 }
 0x339   : > { %p1134_p3 = pnand %p1133_p2, %p1129_p13 }
 0x33f   : > { %904 = vperm.xlu2 %1108, %v1283_v3  }
 0x340   : > { %745 = vperm.xlu1 %1107, %v1283_v3  }
 0x389   : > { %v753_v61 = vpop.permute.xlu2 %752 }
 0x391   : > { %v761_v3 = vpop.permute.xlu2 %760 }
 0x399   : > { %v905_v34 = vpop.permute.xlu2 %904 }
 0x3a2   : > { %v751_v62 = vpop.permute.xlu1 %750 }
 0x3a3   : > { %v754_v63 = vsel %vm398_vm3, %v751_v62, %v753_v61  ;;  %v755_v2 = vsel %vm398_vm3, %v753_v61, %v751_v62 }
 0x3a4   : > { %v756_v5 = vmul.f32 %v755_v2, %v402_v47  ;;  %v757_v6 = vmul.f32 %v754_v63, %v403_v48 }
 0x3a6   : > { %788 = vmatpush.msra.mxu2 %v756_v5  ;;  %808 = vmatpush.msra.mxu3 %v757_v6 }
 0x3a7   : > { %1041 = vmatmul.msk.f32.vlgmr.msra.gmra.mxu2 %vm250_vm0, %v1040_v7  ;;  %1042 = vmatmul.msk.f32.vlgmr.msra.gmra.mxu3 %vm250_vm0, %v1040_v7 }
 0x3aa   : > { %v759_v15 = vpop.permute.xlu1 %758 }
 0x3ab   : > { %v762_v16 = vsel %vm412_vm4, %v759_v15, %v761_v3  ;;  %v763_v47 = vsel %vm412_vm4, %v761_v3, %v759_v15 }
 0x3ac   : > { %v764_v45 = vmul.f32 %v762_v16, %v416_v49  ;;  %v765_v48 = vmul.f32 %v763_v47, %v417_v50  ;;  %v728_v49 = vsel %vm213_vm5, 1, %v1176_v4 }
 0x3ad   : > { %v729_v50 = vperm.slane %v728_v49, 0  ;;  %v730_v18 = vperm.slane %v728_v49, 1 }
 0x3ae   : > { %876 = vmatpush.msrb.mxu2 %v764_v45  ;;  %896 = vmatpush.msrb.mxu3 %v765_v48  ;;  %v833_v30 = vpop.f32.mrf.mxu0  ;;  %v853_v31 = vpop.f32.mrf.mxu1 }
 0x3af   : > { %1046 = vmatmul.msk.f32.vlgmr.msrb.gmra.mxu2 %vm250_vm0, %v1045_v17  ;;  %1047 = vmatmul.msk.f32.vlgmr.msrb.gmra.mxu3 %vm250_vm0, %v1045_v17  ;;  %vm731_vm7 = vcmp.eq.s32.totalorder %v729_v50, 1  ;;  %vm732_vm8 = vcmp.eq.s32.totalorder %v730_v18, 1 }
 0x3b0   : > { %v737_v26 = vsel %vm731_vm7, %v735_v23, 0.0  ;;  %v738_v27 = vsel %vm732_vm8, %v735_v23, 0.0 }
 0x3b2   : > { %v746_v28 = vpop.permute.xlu1 %745 }
 0x3b3   : > { %v748_v32 = vsel %vm742_vm10, %v746_v28, %v737_v26  ;;  %v749_v33 = vsel %vm743_vm11, %v746_v28, %v738_v27 }
 0x3b4   : > { %v907_v9 = vadd.f32 %v905_v34, %v748_v32  ;;  %v908_v12 = vadd.f32 %v905_v34, %v749_v33 }
 0x42a   : > { %v790_v24 = vpop.f32.mrf.mxu2  ;;  %v810_v25 = vpop.f32.mrf.mxu3 }
 0x42b   : > { %v834_v37 = vadd.f32 %v833_v30, %v790_v24  ;;  %v854_v11 = vadd.f32 %v853_v31, %v810_v25 }
 0x432   : > { %v878_v38 = vpop.f32.mrf.mxu2  ;;  %v898_v39 = vpop.f32.mrf.mxu3 }
 0x433   : > { %v901_v40 = vadd.f32 %v878_v38, %v834_v37  ;;  %v902_v4 = vadd.f32 %v898_v39, %v854_v11 }
 0x435   : > { %v909_v41 = vadd.f32 %v907_v9, %v901_v40  ;;  %v910_v42 = vadd.f32 %v908_v12, %v902_v4 }
 0x437   : > { %v916_v43 = vsel %vm914_vm12, %v905_v34, %v909_v41  ;;  %v917_v44 = vsel %vm915_vm13, %v905_v34, %v910_v42 }
 0x438   : > { %v918_v13 = vadd.f32 %v916_v43, %v1261_v0  ;;  %v919_v51 = vadd.f32 %v917_v44, %v1267_v1 }
 0x43a   : > { %v920_v10 = vmax.f32 %v918_v13, 0.0  ;;  %v921_v14 = vmax.f32 %v919_v51, 0.0 }
 0x43c   : > { %922 = vst [vmem:[%s191_s9] sm:$0xff] %v920_v10 }
 0x43d   : > { %923 = vst [vmem:[%s191_s9 + $0x8] sm:$0xff] %v921_v14 }
 0x43e   : > { %1137 = shalt.err (!%p1134_p3)
}
 0x43f   : > { %1054 = dma.vmem_to_hbm [thread:$0]  (%p1247_p5), %s939_s19, 256, %s941_s29, %s925_s30  }
 0x440 PF: > { %p1060_p4 = scmp.ge.s32.totalorder %s1172_s18, 2  ;;  %s952_s23 = sand.u32 1, %s1160_s15  }
 0x441   : > { %s953_s27 = scalar_lea.sflag [#allocation3], %s952_s23 }
 0x442   : > { %p1057_p7 = pnand %p1060_p4, %p1251_p6 }
 0x444   : > { %p1058_p8 = pneg %p1057_p7 }
 0x446   : > { %1155 = dma.done.wait (%p1058_p8), %s953_s27, 256  }
 0x447   : > { %1157 = vsyncadd (%p1058_p8), %s953_s27, 4294967040  ;;  %p14_p9 = scmp.ge.s32.totalorder %s1234_s21, 8   ;;  %s1514_s15 = smov %s1164_s16 }
 0x448   : > { %s1515_s16 = smov %s1168_s17  ;;  %s1516_s17 = smov %s1245_s24 }
 0x449   : > { %s1517_s18 = smov %s1234_s21  ;;  %16 = sbr.rel (!%p14_p9) target bundleno = 3 (0x3), region = 88 }
 0x44e   :  { %959 = vsyncpa [#allocation3], 1 }
 0x44f   :  { %961 = vsyncpa [#allocation3 + $0x1], 1 }

// kernel: tpu_custom_call.1
= control target key start
LH: loop header
LB: loop body
LE: loop exit
PB: predicated region body
PF: predicated region fallthrough
CT: control target
= control target key end

     0   :  { %9 = vsyncpa [#allocation3], 0  ;;  %s1507_s0 = inlined_call_operand.vmem [shape: f32[8,1536], index: 0, kind: input, shape index: {}]   ;;  %s1508_s1 = inlined_call_operand.vmem [shape: f32[12,8,8], index: 1, kind: input, shape index: {}]   ;;  %s1509_s2 = inlined_call_operand.vmem [shape: f32[8,8], index: 2, kind: input, shape index: {}]   ;;  %s1510_s3 = inlined_call_operand.vmem [shape: f32[8,256], index: 3, kind: input, shape index: {}]   ;;  %s1511_s4 = inlined_call_operand.hbm [shape: f32[8,1536], index: 4, kind: output, shape index: {}]  }
   0x1   :  { %11 = vsyncpa [#allocation3 + $0x1], 0  ;;  %s1209_s15 = smov 0   ;;  %s1211_s16 = smov 0  }
   0x2   :  { %s1213_s17 = smov 0   ;;  %s1215_s18 = smov 0  }
   0x3 LB: > { %s1230_s19 = sadd.s32 4294967295, %s1172_s18   ;;  %s1000_s20 = sadd.s32 4294967294, %s1172_s18   ;;  %s1172_s18 = sphi %s1215_s18, %s1517_s18   ;;  %s1168_s17 = sphi %s1213_s17, %s1516_s17   ;;  %s1164_s16 = sphi %s1211_s16, %s1515_s16   ;;  %s1160_s15 = sphi %s1209_s15, %s1514_s15  }
   0x4   : > { %s1234_s21 = sadd.s32 1, %s1172_s18   ;;  %s113_s22 = sadd.s32 1, %s1168_s17 }
   0x5   : > { %s110_s23 = ssub.s32 %s1172_s18, %s1234_s21  ;;  %p123_p0 = scmp.ne.s32.totalorder %s1168_s17, %s1164_s16 }
   0x6   : > { %p111_p1 = scmp.eq.s32.totalorder %s110_s23, 0  ;;  %p124_p2 = scmp.eq.s32.totalorder %s1230_s19, 5 }
   0x7   : > { %p129_p3 = scmp.ne.s32.totalorder %s1164_s16, %s1160_s15  ;;  %p130_p4 = scmp.eq.s32.totalorder %s1000_s20, 5 }
   0x8   : > { %s1245_s24 = scalar_select %p111_p1, %s1168_s17, %s113_s22  }
   0x9   : > { %p1247_p5 = por %p124_p2, %p123_p0  ;;  %p1251_p6 = por %p130_p4, %p129_p3 }
   0xa   : > { %p1003_p7 = scmp.ge.s32.totalorder %s1172_s18, 1  ;;  %p166_p8 = scmp.lt.s32.totalorder %s1172_s18, 7 }
   0xc   : > { %p167_p9 = pnand %p1003_p7, %p166_p8 }
   0xd   : > { %s1005_s27 = sshll.u32 (!%p167_p9), %s1230_s19, 1  ;;  %s1174_s6 = smov (!%p167_p9), 112  }
   0xe   : > { %170 = sbr.rel (%p167_p9) target bundleno = 1088 (0x440), region = 36  ;;  %p193_p10 = scmp.lt.s32.totalorder (!%p167_p9), %s1005_s27, 11 }
   0xf   : > { %s1175_s7 = smov (!%p167_p9), 16   ;;  %s1177_s29 = smov (!%p167_p9), 1  }
  0x10   : > { %s1178_s30 = smov (!%p167_p9), 127   ;;  %s1130_s14 = scalar_lea.hbm (!%p167_p9), %s1511_s4, 96 }
  0x13   : > { %s1519_s27 = smov (!%p193_p10, %s1005_s27), 11  ;;  %v1013_v2 = vld [vmem:[%s1508_s1 + $0x8] sm:$0xff]  ;;  %vm250_vm0 = vcmask 64512   ;;  %v1283_v3 = vld [vmem:[%s1509_s2] sm:$0xff]  ;;  %v1176_v4 = vmov 0   ;;  %v221_v5 = vlaneseq  ;;  %v1018_v26 = vld [vmem:[%s1508_s1 + $0x10] sm:$0xff] }
  0x14   : > { %s1006_s28 = sshll.u32 %s1519_s27, 3  ;;  %1103 = vset.pattern.permute.xlu2 %v1176_v4  ;;  %v1292_v9 = vld [vmem:[%s1510_s3 + $0x2] ss:$8 sm:$0x3]  ;;  %v1179_v43 = vmov 1   ;;  %v1022_v60 = vld [vmem:[%s1508_s1 + $0x18] sm:$0xff] }
  0x15   : > { %s196_s5 = scalar_lea.vmem %s1507_s0, %s1006_s28  ;;  %387 = vperm.xlu2 %1103, %v1283_v3   ;;  %v1287_v8 = vand.u32 127, %v221_v5  ;;  %v1297_v10 = vld [vmem:[%s1510_s3 + $0x3] ss:$8 sm:$0x3]  ;;  %v227_v11 = vperm.slane %v1292_v9, 0  ;;  %v228_v12 = vperm.slane %v1292_v9, 1  ;;  %1104 = vset.pattern.permute.xlu0 %v1179_v43 }
  0x16   : > { %v1261_v0 = vld [vmem:[%s196_s5] sm:$0xff]  ;;  %v1267_v1 = vld [vmem:[%s196_s5 + $0x8] sm:$0xff]  ;;  %v241_v13 = vperm.slane %v1297_v10, 0  ;;  %v242_v14 = vperm.slane %v1297_v10, 1  ;;  %s189_s27 = sand.u32 1, %s1164_s16  }
  0x17   : > { %233 = vrot.lane.b32.xlu1 %v1261_v0, %s1174_s6  ;;  %217 = vrot.lane.b32.xlu0 %v1261_v0, %s1175_s7  ;;  %vm237_vm1 = vcmp.lt.s32.totalorder %v1287_v8, 112  ;;  %vm223_vm2 = vcmp.lt.s32.totalorder %v1287_v8, 16  ;;  %v249_v23 = vld [vmem:[%s1508_s1] sm:$0xff]  ;;  %vm398_vm3 = vcmp.lt.s32.totalorder %v1287_v8, 1  ;;  %vm412_vm4 = vcmp.lt.s32.totalorder %v1287_v8, 127  ;;  %v1027_v63 = vld [vmem:[%s1508_s1 + $0x28] sm:$0xff] }
  0x18   : > { %332 = vmatpush.msra.mxu3 %v1267_v1  ;;  %312 = vmatpush.msra.mxu2 %v1261_v0  ;;  %v1021_v42 = vld [vmem:[%s1508_s1 + $0x20] sm:$0xff] }
  0x19   : > { %1017 = vmatmul.msk.f32.vlgmr.msra.gmra.mxu3 %vm250_vm0, %v1013_v2  ;;  %1016 = vmatmul.msk.f32.vlgmr.msra.gmra.mxu2 %vm250_vm0, %v1013_v2  ;;  %v1344_v45 = vld [vmem:[%s1510_s3] ss:$8 sm:$0x3]  ;;  %v1349_v46 = vld [vmem:[%s1510_s3 + $0x1] ss:$8 sm:$0x3] }
  0x1a   : > { %v402_v47 = vperm.slane %v1344_v45, 0  ;;  %v403_v48 = vperm.slane %v1344_v45, 1  ;;  %v416_v49 = vperm.slane %v1349_v46, 0  ;;  %v417_v50 = vperm.slane %v1349_v46, 1 }
  0x1b   : > { %v1011_v8 = vld [vmem:[%s1510_s3 + $0x5] ss:$8 sm:$0x3]  ;;  %v1010_v46 = vld [vmem:[%s1510_s3 + $0x4] ss:$8 sm:$0x3] }
  0x1c   : > { %vm213_vm5 = vcmp.ne.f32.partialorder %v1011_v8, 0.0  ;;  %vm210_vm6 = vcmp.ne.f32.partialorder %v1010_v46, 0.0 }
  0x1f   : > { %235 = vrot.lane.b32.xlu1 %v1267_v1, %s1174_s6  ;;  %219 = vrot.lane.b32.xlu0 %v1267_v1, %s1175_s7 }
  0x6f   : > { %v388_v33 = vpop.permute.xlu2 %387 }
  0x89   : > { %v234_v6 = vpop.permute.xlu1 %233  ;;  %v218_v7 = vpop.permute.xlu0 %217 }
  0x91   : > { %v236_v15 = vpop.permute.xlu1 %235  ;;  %v220_v16 = vpop.permute.xlu0 %219 }
  0x92   : > { %v238_v17 = vsel %vm237_vm1, %v234_v6, %v236_v15  ;;  %v239_v18 = vsel %vm237_vm1, %v236_v15, %v234_v6  ;;  %v225_v19 = vsel %vm223_vm2, %v220_v16, %v218_v7  ;;  %v224_v20 = vsel %vm223_vm2, %v218_v7, %v220_v16 }
  0x93   : > { %v231_v21 = vmul.f32 %v227_v11, %v225_v19  ;;  %v232_v22 = vmul.f32 %v228_v12, %v224_v20  ;;  %v245_v24 = vmul.f32 %v241_v13, %v238_v17  ;;  %v246_v25 = vmul.f32 %v242_v14, %v239_v18 }
  0x95   : > { %269 = vmatpush.msra.mxu0 %v231_v21  ;;  %289 = vmatpush.msra.mxu1 %v232_v22 }
  0x96   : > { %1014 = vmatmul.msk.f32.vlgmr.msra.gmra.mxu0 %vm250_vm0, %v249_v23  ;;  %1015 = vmatmul.msk.f32.vlgmr.msra.gmra.mxu1 %vm250_vm0, %v249_v23 }
  0x97   : > { %357 = vmatpush.msrb.mxu0 %v245_v24  ;;  %377 = vmatpush.msrb.mxu1 %v246_v25 }
  0x9c   : > { %v314_v29 = vpop.f32.mrf.mxu2  ;;  %v334_v30 = vpop.f32.mrf.mxu3 }
  0x9e   : > { %1019 = vmatmul.msk.f32.vlgmr.msrb.gmra.mxu0 %vm250_vm0, %v1018_v26  ;;  %1020 = vmatmul.msk.f32.vlgmr.msrb.gmra.mxu1 %vm250_vm0, %v1018_v26  ;;  %v1030_v26 = vld [vmem:[%s1508_s1 + $0x38] sm:$0xff] }
 0x113   : > { %v271_v27 = vpop.f32.mrf.mxu0  ;;  %v291_v28 = vpop.f32.mrf.mxu1 }
 0x114   : > { %v315_v31 = vadd.f32 %v314_v29, %v271_v27  ;;  %v335_v32 = vadd.f32 %v334_v30, %v291_v28  ;;  %v1180_v27 = vmov 2  }
 0x11b   : > { %v359_v34 = vpop.f32.mrf.mxu0  ;;  %v379_v35 = vpop.f32.mrf.mxu1 }
 0x11c   : > { %v382_v36 = vadd.f32 %v359_v34, %v315_v31  ;;  %v383_v37 = vadd.f32 %v379_v35, %v335_v32  ;;  %v1031_v34 = vld [vmem:[%s1508_s1 + $0x30] sm:$0xff] }
 0x11e   : > { %v390_v38 = vadd.f32 %v388_v33, %v382_v36  ;;  %v391_v39 = vadd.f32 %v388_v33, %v383_v37 }
 0x120   : > { %v392_v40 = vmax.f32 %v390_v38, 0.0  ;;  %v393_v41 = vmax.f32 %v391_v39, 0.0  ;;  %v1036_v38 = vld [vmem:[%s1508_s1 + $0x40] sm:$0xff] }
 0x122   : > { %396 = vrot.lane.b32.xlu0 %v393_v41, %s1177_s29  ;;  %507 = vmatpush.msra.mxu1 %v393_v41 }
 0x123   : > { %408 = vrot.lane.b32.xlu1 %v392_v40, %s1178_s30  ;;  %394 = vrot.lane.b32.xlu2 %v392_v40, %s1177_s29 }
 0x124   : > { %487 = vmatpush.msra.mxu0 %v392_v40  ;;  %1026 = vmatmul.msk.f32.vlgmr.msra.gmra.mxu1 %vm250_vm0, %v1021_v42 }
 0x125   : > { %1025 = vmatmul.msk.f32.vlgmr.msra.gmra.mxu0 %vm250_vm0, %v1021_v42 }
 0x12a   : > { %560 = vperm.xlu0 %1104, %v1283_v3  }
 0x12b   : > { %410 = vrot.lane.b32.xlu2 %v393_v41, %s1178_s30 }
 0x132   : > { %1105 = vset.pattern.permute.xlu0 %v1180_v27 }
 0x133   : > { %721 = vperm.xlu0 %1105, %v1283_v3  }
 0x17d   : > { %v395_v44 = vpop.permute.xlu2 %394 }
 0x185   : > { %v411_v52 = vpop.permute.xlu2 %410 }
 0x194   : > { %v397_v51 = vpop.permute.xlu0 %396 }
 0x195   : > { %v399_v53 = vsel %vm398_vm3, %v395_v44, %v397_v51  ;;  %v400_v54 = vsel %vm398_vm3, %v397_v51, %v395_v44  ;;  %v409_v55 = vpop.permute.xlu1 %408 }
 0x196   : > { %v413_v56 = vsel %vm412_vm4, %v409_v55, %v411_v52  ;;  %v414_v57 = vsel %vm412_vm4, %v411_v52, %v409_v55  ;;  %v406_v58 = vmul.f32 %v402_v47, %v400_v54  ;;  %v407_v59 = vmul.f32 %v403_v48, %v399_v53 }
 0x197   : > { %v420_v61 = vmul.f32 %v416_v49, %v413_v56  ;;  %v421_v62 = vmul.f32 %v417_v50, %v414_v57  ;;  %v1039_v57 = vld [vmem:[%s1508_s1 + $0x50] sm:$0xff] }
 0x198   : > { %444 = vmatpush.msrb.mxu2 %v406_v58  ;;  %464 = vmatpush.msrb.mxu3 %v407_v59  ;;  %v1181_v58 = vmov 5   ;;  %v1182_v59 = vmov 4  }
 0x199   : > { %1023 = vmatmul.msk.f32.vlgmr.msrb.gmra.mxu2 %vm250_vm0, %v1022_v60  ;;  %1024 = vmatmul.msk.f32.vlgmr.msrb.gmra.mxu3 %vm250_vm0, %v1022_v60  ;;  %v1183_v60 = vmov 3  }
 0x19a   : > { %532 = vmatpush.msra.mxu2 %v420_v61  ;;  %552 = vmatpush.msra.mxu3 %v421_v62 }
 0x19b   : > { %1106 = vset.pattern.permute.xlu0 %v1181_v58  ;;  %1107 = vset.pattern.permute.xlu1 %v1182_v59 }
 0x19c   : > { %v561_v17 = vpop.permute.xlu0 %560  ;;  %734 = vperm.xlu0 %1106, %v1283_v3   ;;  %1108 = vset.pattern.permute.xlu2 %v1183_v60 }
 0x1a1   : > { %1028 = vmatmul.msk.f32.vlgmr.msra.gmra.mxu2 %vm250_vm0, %v1027_v63  ;;  %1029 = vmatmul.msk.f32.vlgmr.msra.gmra.mxu3 %vm250_vm0, %v1027_v63  ;;  %v509_v6 = vpop.f32.mrf.mxu1 }
 0x1a2   : > { %v489_v7 = vpop.f32.mrf.mxu0 }
 0x1a4   : > { %1109 = vset.pattern.permute.xlu0 %v1183_v60 }
 0x21c   : > { %v446_v2 = vpop.f32.mrf.mxu2  ;;  %v466_v5 = vpop.f32.mrf.mxu3 }
 0x21d   : > { %v510_v15 = vadd.f32 %v509_v6, %v466_v5  ;;  %v490_v16 = vadd.f32 %v489_v7, %v446_v2  ;;  %v1040_v7 = vld [vmem:[%s1508_s1 + $0x48] sm:$0xff] }
 0x224   : > { %v534_v18 = vpop.f32.mrf.mxu2  ;;  %v554_v19 = vpop.f32.mrf.mxu3 }
 0x225   : > { %v557_v20 = vadd.f32 %v534_v18, %v490_v16  ;;  %v558_v21 = vadd.f32 %v554_v19, %v510_v15  ;;  %v739_v19 = vsel %vm210_vm6, 1, %v1176_v4 }
 0x227   : > { %v563_v22 = vadd.f32 %v561_v17, %v557_v20  ;;  %v564_v23 = vadd.f32 %v561_v17, %v558_v21  ;;  %v1045_v17 = vld [vmem:[%s1508_s1 + $0x58] sm:$0xff]  ;;  %v1012_v20 = vld [vmem:[%s1510_s3 + $0x6] ss:$8 sm:$0x3]  ;;  %v740_v21 = vperm.slane %v739_v19, 0 }
 0x228   : > { %vm216_vm9 = vcmp.ne.f32.partialorder %v1012_v20, 0.0 }
 0x229   : > { %v565_v24 = vmax.f32 %v563_v22, 0.0  ;;  %v566_v25 = vmax.f32 %v564_v23, 0.0  ;;  %v741_v22 = vperm.slane %v739_v19, 1  ;;  %vm742_vm10 = vcmp.eq.s32.totalorder %v740_v21, 1 }
 0x22b   : > { %569 = vrot.lane.b32.xlu2 %v566_v25, %s1175_s7  ;;  %668 = vmatpush.msrb.mxu3 %v566_v25  ;;  %vm743_vm11 = vcmp.eq.s32.totalorder %v741_v22, 1 }
 0x22c   : > { %567 = vrot.lane.b32.xlu1 %v565_v24, %s1175_s7  ;;  %648 = vmatpush.msrb.mxu2 %v565_v24  ;;  %s1053_s7 = sshll.u32 %s1230_s19, 4 }
 0x22d   : > { %1034 = vmatmul.msk.f32.vlgmr.msrb.gmra.mxu2 %vm250_vm0, %v1030_v26  ;;  %1035 = vmatmul.msk.f32.vlgmr.msrb.gmra.mxu3 %vm250_vm0, %v1030_v26  ;;  %s936_s8 = scalar_lea.hbm %s1511_s4, %s1053_s7 }
 0x233   : > { %577 = vrot.lane.b32.xlu2 %v566_v25, %s1174_s6 }
 0x234   : > { %575 = vrot.lane.b32.xlu1 %v565_v24, %s1174_s6  ;;  %s1004_s6 = sshll.u32 %s189_s27, 4 }
 0x235   : > { %s191_s9 = scalar_lea.vmem [#allocation2], %s1004_s6 }
 0x236   : > { %s938_s19 = sshll.u32 %s191_s9, 4  ;;  %s939_s19 = int_to_ptr.vmem [resolvable:$true] %s938_s19 }
 0x285   : > { %v570_v28 = vpop.permute.xlu2 %569 }
 0x28d   : > { %v578_v35 = vpop.permute.xlu2 %577 }
 0x29e   : > { %v568_v29 = vpop.permute.xlu1 %567 }
 0x29f   : > { %v571_v30 = vsel %vm223_vm2, %v568_v29, %v570_v28  ;;  %v572_v31 = vsel %vm223_vm2, %v570_v28, %v568_v29  ;;  %v911_v29 = vsel %vm216_vm9, 1, %v1176_v4 }
 0x2a0   : > { %v573_v32 = vmul.f32 %v572_v31, %v227_v11  ;;  %v574_v33 = vmul.f32 %v571_v30, %v228_v12 }
 0x2a2   : > { %605 = vmatpush.msrb.mxu0 %v573_v32  ;;  %625 = vmatpush.msrb.mxu1 %v574_v33 }
 0x2a3   : > { %1032 = vmatmul.msk.f32.vlgmr.msrb.gmra.mxu0 %vm250_vm0, %v1031_v34  ;;  %1033 = vmatmul.msk.f32.vlgmr.msrb.gmra.mxu1 %vm250_vm0, %v1031_v34 }
 0x2a6   : > { %v576_v36 = vpop.permute.xlu1 %575 }
 0x2a7   : > { %v579_v37 = vsel %vm237_vm1, %v576_v36, %v578_v35  ;;  %v580_v11 = vsel %vm237_vm1, %v578_v35, %v576_v36  ;;  %v912_v35 = vperm.slane %v911_v29, 0  ;;  %v913_v36 = vperm.slane %v911_v29, 1 }
 0x2a8   : > { %v581_v9 = vmul.f32 %v579_v37, %v241_v13  ;;  %v582_v12 = vmul.f32 %v580_v11, %v242_v14  ;;  %v722_v13 = vpop.permute.xlu0 %721 }
 0x2a9   : > { %vm914_vm12 = vcmp.eq.s32.totalorder %v912_v35, 1  ;;  %vm915_vm13 = vcmp.eq.s32.totalorder %v913_v36, 1 }
 0x2aa   : > { %693 = vmatpush.msra.mxu0 %v581_v9  ;;  %713 = vmatpush.msra.mxu1 %v582_v12 }
 0x2ab   : > { %1037 = vmatmul.msk.f32.vlgmr.msra.gmra.mxu0 %vm250_vm0, %v1036_v38  ;;  %1038 = vmatmul.msk.f32.vlgmr.msra.gmra.mxu1 %vm250_vm0, %v1036_v38 }
 0x2b0   : > { %v670_v41 = vpop.f32.mrf.mxu3  ;;  %v650_v42 = vpop.f32.mrf.mxu2 }
 0x2b1   : > { %v735_v23 = vpop.permute.xlu0 %734 }
 0x320   : > { %v607_v39 = vpop.f32.mrf.mxu0  ;;  %v627_v40 = vpop.f32.mrf.mxu1 }
 0x321   : > { %v671_v43 = vadd.f32 %v670_v41, %v627_v40  ;;  %v651_v44 = vadd.f32 %v650_v42, %v607_v39 }
 0x328   : > { %v695_v51 = vpop.f32.mrf.mxu0  ;;  %v715_v10 = vpop.f32.mrf.mxu1 }
 0x329   : > { %v718_v14 = vadd.f32 %v695_v51, %v651_v44  ;;  %v719_v52 = vadd.f32 %v715_v10, %v671_v43 }
 0x32b   : > { %v724_v53 = vadd.f32 %v722_v13, %v718_v14  ;;  %v725_v54 = vadd.f32 %v722_v13, %v719_v52 }
 0x32d   : > { %v726_v55 = vmax.f32 %v724_v53, 0.0  ;;  %v727_v56 = vmax.f32 %v725_v54, 0.0 }
 0x32f   : > { %752 = vrot.lane.b32.xlu2 %v727_v56, %s1177_s29  ;;  %851 = vmatpush.msrb.mxu1 %v727_v56 }
 0x330   : > { %750 = vrot.lane.b32.xlu1 %v726_v55, %s1177_s29  ;;  %831 = vmatpush.msrb.mxu0 %v726_v55  ;;  %s940_s29 = sshll.u32 %s936_s8, 4  ;;  %s941_s29 = int_to_ptr.hbm [resolvable:$true] %s940_s29 }
 0x331   : > { %1043 = vmatmul.msk.f32.vlgmr.msrb.gmra.mxu0 %vm250_vm0, %v1039_v57  ;;  %1044 = vmatmul.msk.f32.vlgmr.msrb.gmra.mxu1 %vm250_vm0, %v1039_v57  ;;  %s1124_s10 = sshra.s32 %s941_s29, 4  ;;  %s1125_s10 = int_to_ptr.hbm [resolvable:$true] %s1124_s10 }
 0x332   : > { %s1126_s11 = scalar_lea.hbm %s1125_s10, 16  ;;  %p1131_p0 = scmp.lt.s32.totalorder %s1125_s10, %s1511_s4 }
 0x333   : > { %p1127_p11 = scmp.ne.s32.totalorder %s1125_s10, %s1126_s11  ;;  %p1132_p1 = scmp.lt.s32.totalorder %s1130_s14, %s1126_s11 }
 0x335   : > { %p1128_p12 = pnand %p1127_p11, %p1247_p5  ;;  %p1133_p2 = por %p1132_p1, %p1131_p0 }
 0x337   : > { %760 = vrot.lane.b32.xlu2 %v727_v56, %s1178_s30  ;;  %p1129_p13 = pneg %p1128_p12 }
 0x338   : > { %758 = vrot.lane.b32.xlu1 %v726_v55, %s1178_s30  ;;  %s925_s30 = scalar_lea.sflag [#allocation3], %s189_s27 }
 0x339   : > { %p1134_p3 = pnand %p1133_p2, %p1129_p13 }
 0x33f   : > { %904 = vperm.xlu2 %1108, %v1283_v3  }
 0x340   : > { %745 = vperm.xlu1 %1107, %v1283_v3  }
 0x389   : > { %v753_v61 = vpop.permute.xlu2 %752 }
 0x391   : > { %v761_v3 = vpop.permute.xlu2 %760 }
 0x399   : > { %v905_v34 = vpop.permute.xlu2 %904 }
 0x3a2   : > { %v751_v62 = vpop.permute.xlu1 %750 }
 0x3a3   : > { %v754_v63 = vsel %vm398_vm3, %v751_v62, %v753_v61  ;;  %v755_v2 = vsel %vm398_vm3, %v753_v61, %v751_v62 }
 0x3a4   : > { %v756_v5 = vmul.f32 %v755_v2, %v402_v47  ;;  %v757_v6 = vmul.f32 %v754_v63, %v403_v48 }
 0x3a6   : > { %788 = vmatpush.msra.mxu2 %v756_v5  ;;  %808 = vmatpush.msra.mxu3 %v757_v6 }
 0x3a7   : > { %1041 = vmatmul.msk.f32.vlgmr.msra.gmra.mxu2 %vm250_vm0, %v1040_v7  ;;  %1042 = vmatmul.msk.f32.vlgmr.msra.gmra.mxu3 %vm250_vm0, %v1040_v7 }
 0x3aa   : > { %v759_v15 = vpop.permute.xlu1 %758 }
 0x3ab   : > { %v762_v16 = vsel %vm412_vm4, %v759_v15, %v761_v3  ;;  %v763_v47 = vsel %vm412_vm4, %v761_v3, %v759_v15 }
 0x3ac   : > { %v764_v45 = vmul.f32 %v762_v16, %v416_v49  ;;  %v765_v48 = vmul.f32 %v763_v47, %v417_v50  ;;  %v728_v49 = vsel %vm213_vm5, 1, %v1176_v4 }
 0x3ad   : > { %v729_v50 = vperm.slane %v728_v49, 0  ;;  %v730_v18 = vperm.slane %v728_v49, 1 }
 0x3ae   : > { %876 = vmatpush.msrb.mxu2 %v764_v45  ;;  %896 = vmatpush.msrb.mxu3 %v765_v48  ;;  %v833_v30 = vpop.f32.mrf.mxu0  ;;  %v853_v31 = vpop.f32.mrf.mxu1 }
 0x3af   : > { %1046 = vmatmul.msk.f32.vlgmr.msrb.gmra.mxu2 %vm250_vm0, %v1045_v17  ;;  %1047 = vmatmul.msk.f32.vlgmr.msrb.gmra.mxu3 %vm250_vm0, %v1045_v17  ;;  %vm731_vm7 = vcmp.eq.s32.totalorder %v729_v50, 1  ;;  %vm732_vm8 = vcmp.eq.s32.totalorder %v730_v18, 1 }
 0x3b0   : > { %v737_v26 = vsel %vm731_vm7, %v735_v23, 0.0  ;;  %v738_v27 = vsel %vm732_vm8, %v735_v23, 0.0 }
 0x3b2   : > { %v746_v28 = vpop.permute.xlu1 %745 }
 0x3b3   : > { %v748_v32 = vsel %vm742_vm10, %v746_v28, %v737_v26  ;;  %v749_v33 = vsel %vm743_vm11, %v746_v28, %v738_v27 }
 0x3b4   : > { %v907_v9 = vadd.f32 %v905_v34, %v748_v32  ;;  %v908_v12 = vadd.f32 %v905_v34, %v749_v33 }
 0x42a   : > { %v790_v24 = vpop.f32.mrf.mxu2  ;;  %v810_v25 = vpop.f32.mrf.mxu3 }
 0x42b   : > { %v834_v37 = vadd.f32 %v833_v30, %v790_v24  ;;  %v854_v11 = vadd.f32 %v853_v31, %v810_v25 }
 0x432   : > { %v878_v38 = vpop.f32.mrf.mxu2  ;;  %v898_v39 = vpop.f32.mrf.mxu3 }
 0x433   : > { %v901_v40 = vadd.f32 %v878_v38, %v834_v37  ;;  %v902_v4 = vadd.f32 %v898_v39, %v854_v11 }
 0x435   : > { %v909_v41 = vadd.f32 %v907_v9, %v901_v40  ;;  %v910_v42 = vadd.f32 %v908_v12, %v902_v4 }
 0x437   : > { %v916_v43 = vsel %vm914_vm12, %v905_v34, %v909_v41  ;;  %v917_v44 = vsel %vm915_vm13, %v905_v34, %v910_v42 }
 0x438   : > { %v918_v13 = vadd.f32 %v916_v43, %v1261_v0  ;;  %v919_v51 = vadd.f32 %v917_v44, %v1267_v1 }
 0x43a   : > { %v920_v10 = vmax.f32 %v918_v13, 0.0  ;;  %v921_v14 = vmax.f32 %v919_v51, 0.0 }
 0x43c   : > { %922 = vst [vmem:[%s191_s9] sm:$0xff] %v920_v10 }
 0x43d   : > { %923 = vst [vmem:[%s191_s9 + $0x8] sm:$0xff] %v921_v14 }
 0x43e   : > { %1137 = shalt.err (!%p1134_p3)
}
 0x43f   : > { %1054 = dma.vmem_to_hbm [thread:$0]  (%p1247_p5), %s939_s19, 256, %s941_s29, %s925_s30  }
 0x440 PF: > { %p1060_p4 = scmp.ge.s32.totalorder %s1172_s18, 2  ;;  %s952_s23 = sand.u32 1, %s1160_s15  }
 0x441   : > { %s953_s27 = scalar_lea.sflag [#allocation3], %s952_s23 }
 0x442   : > { %p1057_p7 = pnand %p1060_p4, %p1251_p6 }
 0x444   : > { %p1058_p8 = pneg %p1057_p7 }
 0x446   : > { %1155 = dma.done.wait (%p1058_p8), %s953_s27, 256  }
 0x447   : > { %1157 = vsyncadd (%p1058_p8), %s953_s27, 4294967040  ;;  %p14_p9 = scmp.ge.s32.totalorder %s1234_s21, 8   ;;  %s1514_s15 = smov %s1164_s16 }
 0x448   : > { %s1515_s16 = smov %s1168_s17  ;;  %s1516_s17 = smov %s1245_s24 }
 0x449   : > { %s1517_s18 = smov %s1234_s21  ;;  %16 = sbr.rel (!%p14_p9) target bundleno = 3 (0x3), region = 88 }
 0x44e   :  { %959 = vsyncpa [#allocation3], 1 }
 0x44f   :  { %961 = vsyncpa [#allocation3 + $0x1], 1 }

</bundles_post_ra>
